<compile_context>
chip_gen: v5e
topology: v5e:2x2
jax: 0.10.0
libtpu: 0.0.40
codegen_flags: <defaults>
</compile_context>

<pallas_src>
import functools

import jax
import jax.numpy as jnp
from jax import lax
from jax.experimental import pallas as pl
from jax.experimental.pallas import tpu as pltpu


# ----------------------------------------------------------------------------
# Kernel 1: bidirectional LSTM + emission Linear + exp
# ----------------------------------------------------------------------------
def _bilstm_emission_kernel(Hp,
                            x_ref,                       # (T, Bt, E)
                            wih_ref,                     # (E, 8*Hp)  fwd|bwd
                            b_ref,                       # (1, 8*Hp)
                            whh_f_ref, whh_b_ref,        # (Hp, 4*Hp)
                            wef_ref, web_ref, be_ref,    # (Hp,Lp) (Hp,Lp) (1,Lp)
                            em_ref,                      # (T, Bt, Lp)  out
                            gin_f, gin_b,                # (T, Bt, 4*Hp) scratch
                            hf_scr, hb_scr,              # (T, Bt, Hp)   scratch
                            hfs, cfs, hbs, cbs):         # (Bt, Hp)      scratch
    T, Bt, E = x_ref.shape
    G = 4 * Hp
    Lp = em_ref.shape[2]

    # (1) Input projection for both directions: one big MXU matmul, hoisted
    #     out of the recurrence.
    gin = jnp.dot(x_ref[...].reshape(T * Bt, E), wih_ref[...],
                  preferred_element_type=jnp.float32) + b_ref[...]
    gin_f[...] = gin[:, :G].reshape(T, Bt, G)
    gin_b[...] = gin[:, G:].reshape(T, Bt, G)

    hfs[...] = jnp.zeros_like(hfs)
    cfs[...] = jnp.zeros_like(cfs)
    hbs[...] = jnp.zeros_like(hbs)
    cbs[...] = jnp.zeros_like(cbs)

    def cell(gates_in, h_ref, c_ref, whh_ref):
        gates = gates_in + jnp.dot(h_ref[...], whh_ref[...],
                                   preferred_element_type=jnp.float32)
        # Gate slices are 128-lane aligned (each gate occupies its own Hp=128
        # lane block; padded lanes stay exactly zero through the recurrence).
        i = jax.nn.sigmoid(gates[:, 0 * Hp:1 * Hp])
        f = jax.nn.sigmoid(gates[:, 1 * Hp:2 * Hp])
        g = jnp.tanh(gates[:, 2 * Hp:3 * Hp])
        o = jax.nn.sigmoid(gates[:, 3 * Hp:4 * Hp])
        c = f * c_ref[...] + i * g
        h = o * jnp.tanh(c)
        c_ref[...] = c
        h_ref[...] = h
        return h

    # (2) Fused fwd/bwd recurrence: only the h @ Whh matmuls stay in the loop.
    def body(t, carry):
        tb = T - 1 - t
        hf_scr[t] = cell(gin_f[t], hfs, cfs, whh_f_ref)
        hb_scr[tb] = cell(gin_b[tb], hbs, cbs, whh_b_ref)
        return carry

    lax.fori_loop(0, T, body, 0)

    # (3) Emission linear + exp hoisted out of the loop: one lane-dense
    #     (T*Bt, Hp) x (Hp, Lp) matmul and one unmasked store.
    logits = (jnp.dot(hf_scr[...].reshape(T * Bt, Hp), wef_ref[...],
                      preferred_element_type=jnp.float32)
              + jnp.dot(hb_scr[...].reshape(T * Bt, Hp), web_ref[...],
                        preferred_element_type=jnp.float32)
              + be_ref[...])
    em_ref[...] = jnp.exp(logits).reshape(T, Bt, Lp)


def run_bilstm_emission(x_tbe, wih_cat, b_cat, whh_f_p, whh_b_p,
                        wef, web, be_p, b_tile=8):
    T, Bp, E = x_tbe.shape
    Hp = whh_f_p.shape[0]
    G = 4 * Hp
    Lp = wef.shape[1]
    assert Bp % b_tile == 0
    kernel = functools.partial(_bilstm_emission_kernel, Hp)
    w2d = lambda b: (0, 0)
    return pl.pallas_call(
        kernel,
        out_shape=jax.ShapeDtypeStruct((T, Bp, Lp), jnp.float32),
        grid=(Bp // b_tile,),
        in_specs=[
            pl.BlockSpec((T, b_tile, E), lambda b: (0, b, 0)),   # x (time-major)
            pl.BlockSpec((E, 2 * G), w2d),                       # [Wih_f|Wih_b]
            pl.BlockSpec((1, 2 * G), w2d),                       # gate biases
            pl.BlockSpec((Hp, G), w2d),                          # Whh_f
            pl.BlockSpec((Hp, G), w2d),                          # Whh_b
            pl.BlockSpec((Hp, Lp), w2d),                         # We (fwd half)
            pl.BlockSpec((Hp, Lp), w2d),                         # We (bwd half)
            pl.BlockSpec((1, Lp), w2d),                          # be
        ],
        out_specs=pl.BlockSpec((T, b_tile, Lp), lambda b: (0, b, 0)),
        scratch_shapes=[
            pltpu.VMEM((T, b_tile, G), jnp.float32),   # fwd input-gate preacts
            pltpu.VMEM((T, b_tile, G), jnp.float32),   # bwd input-gate preacts
            pltpu.VMEM((T, b_tile, Hp), jnp.float32),  # fwd hidden states
            pltpu.VMEM((T, b_tile, Hp), jnp.float32),  # bwd hidden states
            pltpu.VMEM((b_tile, Hp), jnp.float32),     # h fwd
            pltpu.VMEM((b_tile, Hp), jnp.float32),     # c fwd
            pltpu.VMEM((b_tile, Hp), jnp.float32),     # h bwd
            pltpu.VMEM((b_tile, Hp), jnp.float32),     # c bwd
        ],
        compiler_params=pltpu.CompilerParams(
            dimension_semantics=("parallel",),
            vmem_limit_bytes=32 * 1024 * 1024),
    )(x_tbe, wih_cat, b_cat, whh_f_p, whh_b_p, wef, web, be_p)


# ----------------------------------------------------------------------------
# Kernel 2: CRF decode (reproduces the reference Python loops exactly)
# ----------------------------------------------------------------------------
def _viterbi_kernel(B, T, L, begin_idx, end_idx,
                    em0_ref,      # (B*L,)  exp'd emissions at t=0, SMEM
                    tr_ref,       # (L*L,)  exp'd transitions, SMEM
                    len_ref,      # (B,)    int32 lengths, SMEM
                    path_ref,     # (B*T,)  int32 out, SMEM
                    bp_ref,       # (T*L,)  int32 scratch (best_point)
                    alpha_ref):   # (L,)    f32 scratch
    # path = torch.zeros_like(tokens)
    def zero_path(n, c):
        path_ref[n] = jnp.int32(0)
        return c
    lax.fori_loop(0, B * T, zero_path, 0)

    def per_batch(i, c0):
        li = len_ref[i]   # assumed >= 2 (same assumption as the reference)

        # alpha = emission[i][0]
        def init_alpha(k, c):
            alpha_ref[k] = em0_ref[i * L + k]
            return c
        lax.fori_loop(0, L, init_alpha, 0)

        # Only row li-1 of best_point is read without ever being written by
        # the step loop; zero just that row instead of the whole (T*L) buffer.
        def zero_bp(k, c):
            bp_ref[(li - 1) * L + k] = jnp.int32(0)
            return c
        lax.fori_loop(0, L, zero_bp, 0)

        def step(j, c):
            # best_point[i][j][k] = argmax_m(alpha[m] + transition[m][k])
            # using the pre-update alpha (first k-loop of the reference).
            def argmax_k(k, c1):
                def scan_m(m, carry):
                    bv, bi = carry
                    v = alpha_ref[m] + tr_ref[m * L + k]
                    take = v > bv
                    return (jnp.where(take, v, bv), jnp.where(take, m, bi))
                bv0 = alpha_ref[0] + tr_ref[k]
                _, bi = lax.fori_loop(1, L, scan_m, (bv0, jnp.int32(0)))
                bp_ref[j * L + k] = bi
                return c1
            lax.fori_loop(0, L, argmax_k, 0)

            # Sequential, in-place alpha update — exactly like the reference
            # (alpha may already be partially updated for src < k).
            def upd_k(k, c1):
                src = bp_ref[j * L + k]
                alpha_ref[k] = alpha_ref[src] + tr_ref[src * L + k]
                return c1
            lax.fori_loop(0, L, upd_k, 0)
            return c
        lax.fori_loop(1, li - 1, step, 0)

        # backtracking
        path_ref[i * T + li - 1] = jnp.int32(end_idx)

        def back(s, c):
            j = li - 2 - s
            nxt = path_ref[i * T + j + 1]
            path_ref[i * T + j] = bp_ref[(j + 1) * L + nxt]
            return c
        lax.fori_loop(0, li - 2, back, 0)

        path_ref[i * T] = jnp.int32(begin_idx)
        return c0

    lax.fori_loop(0, B, per_batch, 0)


def run_viterbi(em0, trans_exp, lengths, T, begin_idx, end_idx):
    B, L = em0.shape
    kernel = functools.partial(_viterbi_kernel, B, T, L, begin_idx, end_idx)
    path_flat = pl.pallas_call(
        kernel,
        out_shape=jax.ShapeDtypeStruct((B * T,), jnp.int32),
        in_specs=[pl.BlockSpec(memory_space=pltpu.MemorySpace.SMEM)] * 3,
        out_specs=pl.BlockSpec(memory_space=pltpu.MemorySpace.SMEM),
        scratch_shapes=[pltpu.SMEM((T * L,), jnp.int32),
                        pltpu.SMEM((L,), jnp.float32)],
    )(em0.reshape(-1), trans_exp.reshape(-1), lengths.astype(jnp.int32))
    return path_flat.reshape(B, T)


# ----------------------------------------------------------------------------
# One-time parameter preparation (pre-transpose / pad; not done per call)
# ----------------------------------------------------------------------------
def prepare_params(params, H, Hp, L, Lp):
    (emb, wih_f, whh_f, b_f, wih_b, whh_b, b_b, we, be, transition) = params
    G = 4 * Hp

    def pad_gate_cols(w):  # (rows, 4H) -> (rows, 4Hp); gate g -> cols [g*Hp, g*Hp+H)
        rows = w.shape[0]
        out = jnp.zeros((rows, G), w.dtype)
        for g in range(4):
            out = out.at[:, g * Hp:g * Hp + H].set(w[:, g * H:(g + 1) * H])
        return out

    wih_cat = jnp.concatenate([pad_gate_cols(wih_f.T),
                               pad_gate_cols(wih_b.T)], axis=1)          # (E, 2G)
    b_cat = jnp.concatenate([pad_gate_cols(b_f.reshape(1, 4 * H)),
                             pad_gate_cols(b_b.reshape(1, 4 * H))], axis=1)  # (1, 2G)

    def pad_whh(whh):  # torch layout (4H, H) -> (Hp, 4Hp)
        return jnp.zeros((Hp, G), whh.dtype).at[:H].set(pad_gate_cols(whh.T))

    whh_f_p = pad_whh(whh_f)
    whh_b_p = pad_whh(whh_b)

    wef = jnp.zeros((Hp, Lp), we.dtype).at[:H, :L].set(we[:, :H].T)
    web = jnp.zeros((Hp, Lp), we.dtype).at[:H, :L].set(we[:, H:].T)
    be_p = jnp.zeros((1, Lp), be.dtype).at[0, :L].set(be)

    trans_exp = jnp.exp(transition)
    return emb, wih_cat, b_cat, whh_f_p, whh_b_p, wef, web, be_p, trans_exp


# ----------------------------------------------------------------------------
# End-to-end forward (decode path)
# ----------------------------------------------------------------------------
def bilstm_crf_forward(tokens, lengths, prepped, L, begin_idx, end_idx):
    emb, wih_cat, b_cat, whh_f_p, whh_b_p, wef, web, be_p, trans_exp = prepped
    B, T = tokens.shape
    b_tile = 8
    B_pad = ((B + b_tile - 1) // b_tile) * b_tile

    # glue: embedding gather + layout transpose to time-major + batch pad
    x = emb[tokens]                            # (B, T, E)
    x_tbe = jnp.transpose(x, (1, 0, 2))        # (T, B, E)
    if B_pad != B:
        x_tbe = jnp.pad(x_tbe, ((0, 0), (0, B_pad - B), (0, 0)))

    em_tbl = run_bilstm_emission(x_tbe, wih_cat, b_cat, whh_f_p, whh_b_p,
                                 wef, web, be_p, b_tile=b_tile)   # (T, B_pad, Lp)
    emission = jnp.transpose(em_tbl[:, :B, :L], (1, 0, 2))        # (B, T, L)

    # Viterbi only ever reads emission[i][0]; slice before the SMEM DMA.
    path = run_viterbi(emission[:, 0, :], trans_exp, lengths, T,
                       begin_idx, end_idx)
    return path, emission


if __name__ == "__main__":
    # model hyperparameters (small, consistent with the module)
    vocab, E, H, L = 50, 16, 32, 6
    padding_idx, begin_idx, end_idx = 0, 1, 5
    Hp, Lp = 128, 128          # lane-aligned padded hidden / label dims
    B, T = 2, 8
    lengths = jnp.array([8, 6], dtype=jnp.int32)

    key = jax.random.PRNGKey(0)
    keys = jax.random.split(key, 12)

    emb = jax.random.normal(keys[0], (vocab, E), jnp.float32) * 0.5
    emb = emb.at[padding_idx].set(0.0)   # nn.Embedding zeroes the padding row

    def lstm_weights(k1, k2, k3, k4):
        wih = jax.random.normal(k1, (4 * H, E), jnp.float32) * 0.1
        whh = jax.random.normal(k2, (4 * H, H), jnp.float32) * 0.1
        bih = jax.random.normal(k3, (4 * H,), jnp.float32) * 0.1
        bhh = jax.random.normal(k4, (4 * H,), jnp.float32) * 0.1
        return wih, whh, bih + bhh

    wih_f, whh_f, b_f = lstm_weights(keys[1], keys[2], keys[3], keys[4])
    wih_b, whh_b, b_b = lstm_weights(keys[5], keys[6], keys[7], keys[8])
    we = jax.random.normal(keys[9], (L, 2 * H), jnp.float32) * 0.1
    be = jax.random.normal(keys[10], (L,), jnp.float32) * 0.1
    transition = jax.random.uniform(keys[11], (L, L), jnp.float32)  # torch.rand

    tokens = jax.random.randint(jax.random.PRNGKey(42), (B, T), 1, vocab,
                                dtype=jnp.int32)

    params = (emb, wih_f, whh_f, b_f, wih_b, whh_b, b_b, we, be, transition)
    prepped = prepare_params(params, H, Hp, L, Lp)

    path, emission = bilstm_crf_forward(tokens, lengths, prepped, L,
                                        begin_idx, end_idx)
    path = jax.block_until_ready(path)
    emission = jax.block_until_ready(emission)

    assert path.shape == (B, T) and emission.shape == (B, T, L)
    assert int(path[0, 0]) == begin_idx
    assert int(path[0, int(lengths[0]) - 1]) == end_idx
    print("KERNEL_OK")
</pallas_src>

<mosaic_0001>
module attributes {stable_mosaic.version = 11 : i64} {
  func.func @_bilstm_emission_kernel(%arg0: i32, %arg1: memref<8x8x16xf32, #tpu.memory_space<vmem>>, %arg2: memref<16x1024xf32, #tpu.memory_space<vmem>>, %arg3: memref<1x1024xf32, #tpu.memory_space<vmem>>, %arg4: memref<128x512xf32, #tpu.memory_space<vmem>>, %arg5: memref<128x512xf32, #tpu.memory_space<vmem>>, %arg6: memref<128x128xf32, #tpu.memory_space<vmem>>, %arg7: memref<128x128xf32, #tpu.memory_space<vmem>>, %arg8: memref<1x128xf32, #tpu.memory_space<vmem>>, %arg9: memref<8x8x128xf32, #tpu.memory_space<vmem>>, %arg10: memref<8x8x512xf32, #tpu.memory_space<vmem>>, %arg11: memref<8x8x512xf32, #tpu.memory_space<vmem>>, %arg12: memref<8x8x128xf32, #tpu.memory_space<vmem>>, %arg13: memref<8x8x128xf32, #tpu.memory_space<vmem>>, %arg14: memref<8x128xf32, #tpu.memory_space<vmem>>, %arg15: memref<8x128xf32, #tpu.memory_space<vmem>>, %arg16: memref<8x128xf32, #tpu.memory_space<vmem>>, %arg17: memref<8x128xf32, #tpu.memory_space<vmem>>) attributes {dimension_semantics = [#tpu.dimension_semantics<parallel>], iteration_bounds = array<i64: 1>, scalar_prefetch = 0 : i64, scratch_operands = 8 : i64, tpu.core_type = #tpu.core_type<tc>, window_params = [{transform_indices = @transform_0, window_bounds = array<i64: 8, 8, 16>}, {pipeline_mode = #tpu.pipeline_mode<synchronous>, transform_indices = @transform_1, window_bounds = array<i64: 16, 1024>}, {pipeline_mode = #tpu.pipeline_mode<synchronous>, transform_indices = @transform_2, window_bounds = array<i64: 1, 1024>}, {pipeline_mode = #tpu.pipeline_mode<synchronous>, transform_indices = @transform_3, window_bounds = array<i64: 128, 512>}, {pipeline_mode = #tpu.pipeline_mode<synchronous>, transform_indices = @transform_4, window_bounds = array<i64: 128, 512>}, {pipeline_mode = #tpu.pipeline_mode<synchronous>, transform_indices = @transform_5, window_bounds = array<i64: 128, 128>}, {pipeline_mode = #tpu.pipeline_mode<synchronous>, transform_indices = @transform_6, window_bounds = array<i64: 128, 128>}, {pipeline_mode = #tpu.pipeline_mode<synchronous>, transform_indices = @transform_7, window_bounds = array<i64: 1, 128>}, {transform_indices = @transform_8, window_bounds = array<i64: 8, 8, 128>}]} {
    %c0 = arith.constant 0 : index
    %c0_0 = arith.constant 0 : index
    %c0_1 = arith.constant 0 : index
    %0 = vector.load %arg1[%c0, %c0_0, %c0_1] : memref<8x8x16xf32, #tpu.memory_space<vmem>>, vector<8x8x16xf32>
    %1 = vector.shape_cast %0 : vector<8x8x16xf32> to vector<64x16xf32>
    %c0_2 = arith.constant 0 : index
    %c0_3 = arith.constant 0 : index
    %2 = vector.load %arg2[%c0_2, %c0_3] : memref<16x1024xf32, #tpu.memory_space<vmem>>, vector<16x1024xf32>
    %cst = arith.constant dense<0.000000e+00> : vector<64x1024xf32>
    %3 = tpu.matmul %1, %2, %cst {dimension_numbers = #tpu.dot_dimension_numbers<[1], [0], [0], [1], [0, 0, 1, 1], [], []>} : vector<64x16xf32>, vector<16x1024xf32>, vector<64x1024xf32> -> vector<64x1024xf32>
    %c0_4 = arith.constant 0 : index
    %c0_5 = arith.constant 0 : index
    %4 = vector.load %arg3[%c0_4, %c0_5] : memref<1x1024xf32, #tpu.memory_space<vmem>>, vector<1x1024xf32>
    %5 = vector.broadcast %4 : vector<1x1024xf32> to vector<64x1024xf32>
    %6 = arith.addf %3, %5 : vector<64x1024xf32>
    %7 = vector.extract_strided_slice %6 {offsets = [0, 0], sizes = [64, 512], strides = [1, 1]} : vector<64x1024xf32> to vector<64x512xf32>
    %8 = vector.shape_cast %7 : vector<64x512xf32> to vector<8x8x512xf32>
    %c0_6 = arith.constant 0 : index
    %c0_7 = arith.constant 0 : index
    %c0_8 = arith.constant 0 : index
    %9 = vector.load %arg10[%c0_6, %c0_7, %c0_8] : memref<8x8x512xf32, #tpu.memory_space<vmem>>, vector<8x8x512xf32>
    tpu.vector_store %arg10[%c0_6, %c0_7, %c0_8], %8 {strides = array<i32>} : memref<8x8x512xf32, #tpu.memory_space<vmem>>, vector<8x8x512xf32>,
    %10 = vector.extract_strided_slice %6 {offsets = [0, 512], sizes = [64, 512], strides = [1, 1]} : vector<64x1024xf32> to vector<64x512xf32>
    %11 = vector.shape_cast %10 : vector<64x512xf32> to vector<8x8x512xf32>
    %c0_9 = arith.constant 0 : index
    %c0_10 = arith.constant 0 : index
    %c0_11 = arith.constant 0 : index
    %12 = vector.load %arg11[%c0_9, %c0_10, %c0_11] : memref<8x8x512xf32, #tpu.memory_space<vmem>>, vector<8x8x512xf32>
    tpu.vector_store %arg11[%c0_9, %c0_10, %c0_11], %11 {strides = array<i32>} : memref<8x8x512xf32, #tpu.memory_space<vmem>>, vector<8x8x512xf32>,
    %cst_12 = arith.constant 0.000000e+00 : f32
    %13 = vector.broadcast %cst_12 : f32 to vector<8x128xf32>
    %c0_13 = arith.constant 0 : index
    %c0_14 = arith.constant 0 : index
    %14 = vector.load %arg14[%c0_13, %c0_14] : memref<8x128xf32, #tpu.memory_space<vmem>>, vector<8x128xf32>
    tpu.vector_store %arg14[%c0_13, %c0_14], %13 {strides = array<i32>} : memref<8x128xf32, #tpu.memory_space<vmem>>, vector<8x128xf32>,
    %cst_15 = arith.constant 0.000000e+00 : f32
    %15 = vector.broadcast %cst_15 : f32 to vector<8x128xf32>
    %c0_16 = arith.constant 0 : index
    %c0_17 = arith.constant 0 : index
    %16 = vector.load %arg15[%c0_16, %c0_17] : memref<8x128xf32, #tpu.memory_space<vmem>>, vector<8x128xf32>
    tpu.vector_store %arg15[%c0_16, %c0_17], %15 {strides = array<i32>} : memref<8x128xf32, #tpu.memory_space<vmem>>, vector<8x128xf32>,
    %cst_18 = arith.constant 0.000000e+00 : f32
    %17 = vector.broadcast %cst_18 : f32 to vector<8x128xf32>
    %c0_19 = arith.constant 0 : index
    %c0_20 = arith.constant 0 : index
    %18 = vector.load %arg16[%c0_19, %c0_20] : memref<8x128xf32, #tpu.memory_space<vmem>>, vector<8x128xf32>
    tpu.vector_store %arg16[%c0_19, %c0_20], %17 {strides = array<i32>} : memref<8x128xf32, #tpu.memory_space<vmem>>, vector<8x128xf32>,
    %cst_21 = arith.constant 0.000000e+00 : f32
    %19 = vector.broadcast %cst_21 : f32 to vector<8x128xf32>
    %c0_22 = arith.constant 0 : index
    %c0_23 = arith.constant 0 : index
    %20 = vector.load %arg17[%c0_22, %c0_23] : memref<8x128xf32, #tpu.memory_space<vmem>>, vector<8x128xf32>
    tpu.vector_store %arg17[%c0_22, %c0_23], %19 {strides = array<i32>} : memref<8x128xf32, #tpu.memory_space<vmem>>, vector<8x128xf32>,
    %c0_i32 = arith.constant 0 : i32
    %c8_i32 = arith.constant 8 : i32
    %21 = arith.addi %c0_i32, %c8_i32 : i32
    %c1_i32 = arith.constant 1 : i32
    scf.for %arg18 = %c0_i32 to %21 step %c1_i32  : i32 {
      %c7_i32 = arith.constant 7 : i32
      %37 = arith.subi %c7_i32, %arg18 : i32
      %38 = arith.index_cast %arg18 : i32 to index
      %c0_42 = arith.constant 0 : index
      %c0_43 = arith.constant 0 : index
      %39 = vector.load %arg10[%38, %c0_42, %c0_43] : memref<8x8x512xf32, #tpu.memory_space<vmem>>, vector<1x8x512xf32>
      %40 = vector.shape_cast %39 : vector<1x8x512xf32> to vector<8x512xf32>
      %c0_44 = arith.constant 0 : index
      %c0_45 = arith.constant 0 : index
      %41 = vector.load %arg14[%c0_44, %c0_45] : memref<8x128xf32, #tpu.memory_space<vmem>>, vector<8x128xf32>
      %c0_46 = arith.constant 0 : index
      %c0_47 = arith.constant 0 : index
      %42 = vector.load %arg4[%c0_46, %c0_47] : memref<128x512xf32, #tpu.memory_space<vmem>>, vector<128x512xf32>
      %cst_48 = arith.constant dense<0.000000e+00> : vector<8x512xf32>
      %43 = tpu.matmul %41, %42, %cst_48 {dimension_numbers = #tpu.dot_dimension_numbers<[1], [0], [0], [1], [0, 0, 1, 1], [], []>} : vector<8x128xf32>, vector<128x512xf32>, vector<8x512xf32> -> vector<8x512xf32>
      %44 = arith.addf %40, %43 : vector<8x512xf32>
      %45 = vector.extract_strided_slice %44 {offsets = [0, 0], sizes = [8, 128], strides = [1, 1]} : vector<8x512xf32> to vector<8x128xf32>
      %46 = arith.negf %45 : vector<8x128xf32>
      %47 = math.exp %46 : vector<8x128xf32>
      %cst_49 = arith.constant 1.000000e+00 : f32
      %48 = vector.broadcast %cst_49 : f32 to vector<8x128xf32>
      %49 = arith.addf %48, %47 : vector<8x128xf32>
      %50 = arith.divf %48, %49 : vector<8x128xf32>
      %51 = vector.extract_strided_slice %44 {offsets = [0, 128], sizes = [8, 128], strides = [1, 1]} : vector<8x512xf32> to vector<8x128xf32>
      %52 = arith.negf %51 : vector<8x128xf32>
      %53 = math.exp %52 : vector<8x128xf32>
      %cst_50 = arith.constant 1.000000e+00 : f32
      %54 = vector.broadcast %cst_50 : f32 to vector<8x128xf32>
      %55 = arith.addf %54, %53 : vector<8x128xf32>
      %56 = arith.divf %54, %55 : vector<8x128xf32>
      %57 = vector.extract_strided_slice %44 {offsets = [0, 256], sizes = [8, 128], strides = [1, 1]} : vector<8x512xf32> to vector<8x128xf32>
      %58 = math.tanh %57 : vector<8x128xf32>
      %59 = vector.extract_strided_slice %44 {offsets = [0, 384], sizes = [8, 128], strides = [1, 1]} : vector<8x512xf32> to vector<8x128xf32>
      %60 = arith.negf %59 : vector<8x128xf32>
      %61 = math.exp %60 : vector<8x128xf32>
      %cst_51 = arith.constant 1.000000e+00 : f32
      %62 = vector.broadcast %cst_51 : f32 to vector<8x128xf32>
      %63 = arith.addf %62, %61 : vector<8x128xf32>
      %64 = arith.divf %62, %63 : vector<8x128xf32>
      %c0_52 = arith.constant 0 : index
      %c0_53 = arith.constant 0 : index
      %65 = vector.load %arg15[%c0_52, %c0_53] : memref<8x128xf32, #tpu.memory_space<vmem>>, vector<8x128xf32>
      %66 = arith.mulf %56, %65 : vector<8x128xf32>
      %67 = arith.mulf %50, %58 : vector<8x128xf32>
      %68 = arith.addf %66, %67 : vector<8x128xf32>
      %69 = math.tanh %68 : vector<8x128xf32>
      %70 = arith.mulf %64, %69 : vector<8x128xf32>
      %c0_54 = arith.constant 0 : index
      %c0_55 = arith.constant 0 : index
      %71 = vector.load %arg15[%c0_54, %c0_55] : memref<8x128xf32, #tpu.memory_space<vmem>>, vector<8x128xf32>
      tpu.vector_store %arg15[%c0_54, %c0_55], %68 {strides = array<i32>} : memref<8x128xf32, #tpu.memory_space<vmem>>, vector<8x128xf32>,
      %c0_56 = arith.constant 0 : index
      %c0_57 = arith.constant 0 : index
      %72 = vector.load %arg14[%c0_56, %c0_57] : memref<8x128xf32, #tpu.memory_space<vmem>>, vector<8x128xf32>
      tpu.vector_store %arg14[%c0_56, %c0_57], %70 {strides = array<i32>} : memref<8x128xf32, #tpu.memory_space<vmem>>, vector<8x128xf32>,
      %73 = arith.index_cast %arg18 : i32 to index
      %c0_58 = arith.constant 0 : index
      %c0_59 = arith.constant 0 : index
      %74 = vector.load %arg12[%73, %c0_58, %c0_59] : memref<8x8x128xf32, #tpu.memory_space<vmem>>, vector<1x8x128xf32>
      %75 = vector.shape_cast %74 : vector<1x8x128xf32> to vector<8x128xf32>
      %76 = vector.shape_cast %70 : vector<8x128xf32> to vector<1x8x128xf32>
      tpu.vector_store %arg12[%73, %c0_58, %c0_59], %76 {strides = array<i32>} : memref<8x8x128xf32, #tpu.memory_space<vmem>>, vector<1x8x128xf32>,
      %77 = arith.index_cast %37 : i32 to index
      %c0_60 = arith.constant 0 : index
      %c0_61 = arith.constant 0 : index
      %78 = vector.load %arg11[%77, %c0_60, %c0_61] : memref<8x8x512xf32, #tpu.memory_space<vmem>>, vector<1x8x512xf32>
      %79 = vector.shape_cast %78 : vector<1x8x512xf32> to vector<8x512xf32>
      %c0_62 = arith.constant 0 : index
      %c0_63 = arith.constant 0 : index
      %80 = vector.load %arg16[%c0_62, %c0_63] : memref<8x128xf32, #tpu.memory_space<vmem>>, vector<8x128xf32>
      %c0_64 = arith.constant 0 : index
      %c0_65 = arith.constant 0 : index
      %81 = vector.load %arg5[%c0_64, %c0_65] : memref<128x512xf32, #tpu.memory_space<vmem>>, vector<128x512xf32>
      %cst_66 = arith.constant dense<0.000000e+00> : vector<8x512xf32>
      %82 = tpu.matmul %80, %81, %cst_66 {dimension_numbers = #tpu.dot_dimension_numbers<[1], [0], [0], [1], [0, 0, 1, 1], [], []>} : vector<8x128xf32>, vector<128x512xf32>, vector<8x512xf32> -> vector<8x512xf32>
      %83 = arith.addf %79, %82 : vector<8x512xf32>
      %84 = vector.extract_strided_slice %83 {offsets = [0, 0], sizes = [8, 128], strides = [1, 1]} : vector<8x512xf32> to vector<8x128xf32>
      %85 = arith.negf %84 : vector<8x128xf32>
      %86 = math.exp %85 : vector<8x128xf32>
      %cst_67 = arith.constant 1.000000e+00 : f32
      %87 = vector.broadcast %cst_67 : f32 to vector<8x128xf32>
      %88 = arith.addf %87, %86 : vector<8x128xf32>
      %89 = arith.divf %87, %88 : vector<8x128xf32>
      %90 = vector.extract_strided_slice %83 {offsets = [0, 128], sizes = [8, 128], strides = [1, 1]} : vector<8x512xf32> to vector<8x128xf32>
      %91 = arith.negf %90 : vector<8x128xf32>
      %92 = math.exp %91 : vector<8x128xf32>
      %cst_68 = arith.constant 1.000000e+00 : f32
      %93 = vector.broadcast %cst_68 : f32 to vector<8x128xf32>
      %94 = arith.addf %93, %92 : vector<8x128xf32>
      %95 = arith.divf %93, %94 : vector<8x128xf32>
      %96 = vector.extract_strided_slice %83 {offsets = [0, 256], sizes = [8, 128], strides = [1, 1]} : vector<8x512xf32> to vector<8x128xf32>
      %97 = math.tanh %96 : vector<8x128xf32>
      %98 = vector.extract_strided_slice %83 {offsets = [0, 384], sizes = [8, 128], strides = [1, 1]} : vector<8x512xf32> to vector<8x128xf32>
      %99 = arith.negf %98 : vector<8x128xf32>
      %100 = math.exp %99 : vector<8x128xf32>
      %cst_69 = arith.constant 1.000000e+00 : f32
      %101 = vector.broadcast %cst_69 : f32 to vector<8x128xf32>
      %102 = arith.addf %101, %100 : vector<8x128xf32>
      %103 = arith.divf %101, %102 : vector<8x128xf32>
      %c0_70 = arith.constant 0 : index
      %c0_71 = arith.constant 0 : index
      %104 = vector.load %arg17[%c0_70, %c0_71] : memref<8x128xf32, #tpu.memory_space<vmem>>, vector<8x128xf32>
      %105 = arith.mulf %95, %104 : vector<8x128xf32>
      %106 = arith.mulf %89, %97 : vector<8x128xf32>
      %107 = arith.addf %105, %106 : vector<8x128xf32>
      %108 = math.tanh %107 : vector<8x128xf32>
      %109 = arith.mulf %103, %108 : vector<8x128xf32>
      %c0_72 = arith.constant 0 : index
      %c0_73 = arith.constant 0 : index
      %110 = vector.load %arg17[%c0_72, %c0_73] : memref<8x128xf32, #tpu.memory_space<vmem>>, vector<8x128xf32>
      tpu.vector_store %arg17[%c0_72, %c0_73], %107 {strides = array<i32>} : memref<8x128xf32, #tpu.memory_space<vmem>>, vector<8x128xf32>,
      %c0_74 = arith.constant 0 : index
      %c0_75 = arith.constant 0 : index
      %111 = vector.load %arg16[%c0_74, %c0_75] : memref<8x128xf32, #tpu.memory_space<vmem>>, vector<8x128xf32>
      tpu.vector_store %arg16[%c0_74, %c0_75], %109 {strides = array<i32>} : memref<8x128xf32, #tpu.memory_space<vmem>>, vector<8x128xf32>,
      %112 = arith.index_cast %37 : i32 to index
      %c0_76 = arith.constant 0 : index
      %c0_77 = arith.constant 0 : index
      %113 = vector.load %arg13[%112, %c0_76, %c0_77] : memref<8x8x128xf32, #tpu.memory_space<vmem>>, vector<1x8x128xf32>
      %114 = vector.shape_cast %113 : vector<1x8x128xf32> to vector<8x128xf32>
      %115 = vector.shape_cast %109 : vector<8x128xf32> to vector<1x8x128xf32>
      tpu.vector_store %arg13[%112, %c0_76, %c0_77], %115 {strides = array<i32>} : memref<8x8x128xf32, #tpu.memory_space<vmem>>, vector<1x8x128xf32>,
    }
    %c8_i32_24 = arith.constant 8 : i32
    %c0_25 = arith.constant 0 : index
    %c0_26 = arith.constant 0 : index
    %c0_27 = arith.constant 0 : index
    %22 = vector.load %arg12[%c0_25, %c0_26, %c0_27] : memref<8x8x128xf32, #tpu.memory_space<vmem>>, vector<8x8x128xf32>
    %23 = vector.shape_cast %22 : vector<8x8x128xf32> to vector<64x128xf32>
    %c0_28 = arith.constant 0 : index
    %c0_29 = arith.constant 0 : index
    %24 = vector.load %arg6[%c0_28, %c0_29] : memref<128x128xf32, #tpu.memory_space<vmem>>, vector<128x128xf32>
    %cst_30 = arith.constant dense<0.000000e+00> : vector<64x128xf32>
    %25 = tpu.matmul %23, %24, %cst_30 {dimension_numbers = #tpu.dot_dimension_numbers<[1], [0], [0], [1], [0, 0, 1, 1], [], []>} : vector<64x128xf32>, vector<128x128xf32>, vector<64x128xf32> -> vector<64x128xf32>
    %c0_31 = arith.constant 0 : index
    %c0_32 = arith.constant 0 : index
    %c0_33 = arith.constant 0 : index
    %26 = vector.load %arg13[%c0_31, %c0_32, %c0_33] : memref<8x8x128xf32, #tpu.memory_space<vmem>>, vector<8x8x128xf32>
    %27 = vector.shape_cast %26 : vector<8x8x128xf32> to vector<64x128xf32>
    %c0_34 = arith.constant 0 : index
    %c0_35 = arith.constant 0 : index
    %28 = vector.load %arg7[%c0_34, %c0_35] : memref<128x128xf32, #tpu.memory_space<vmem>>, vector<128x128xf32>
    %cst_36 = arith.constant dense<0.000000e+00> : vector<64x128xf32>
    %29 = tpu.matmul %27, %28, %cst_36 {dimension_numbers = #tpu.dot_dimension_numbers<[1], [0], [0], [1], [0, 0, 1, 1], [], []>} : vector<64x128xf32>, vector<128x128xf32>, vector<64x128xf32> -> vector<64x128xf32>
    %30 = arith.addf %25, %29 : vector<64x128xf32>
    %c0_37 = arith.constant 0 : index
    %c0_38 = arith.constant 0 : index
    %31 = vector.load %arg8[%c0_37, %c0_38] : memref<1x128xf32, #tpu.memory_space<vmem>>, vector<1x128xf32>
    %32 = vector.broadcast %31 : vector<1x128xf32> to vector<64x128xf32>
    %33 = arith.addf %30, %32 : vector<64x128xf32>
    %34 = math.exp %33 : vector<64x128xf32>
    %35 = vector.shape_cast %34 : vector<64x128xf32> to vector<8x8x128xf32>
    %c0_39 = arith.constant 0 : index
    %c0_40 = arith.constant 0 : index
    %c0_41 = arith.constant 0 : index
    %36 = vector.load %arg9[%c0_39, %c0_40, %c0_41] : memref<8x8x128xf32, #tpu.memory_space<vmem>>, vector<8x8x128xf32>
    tpu.vector_store %arg9[%c0_39, %c0_40, %c0_41], %35 {strides = array<i32>} : memref<8x8x128xf32, #tpu.memory_space<vmem>>, vector<8x8x128xf32>,
    return
  }
  func.func @transform_0(%arg0: i32) -> (i32, i32, i32) {
    %c0_i32 = arith.constant 0 : i32
    %c0_i32_0 = arith.constant 0 : i32
    %c0_i32_1 = arith.constant 0 : i32
    return %c0_i32, %arg0, %c0_i32_0 : i32, i32, i32
  }
  func.func @transform_1(%arg0: i32) -> (i32, i32) {
    %c0_i32 = arith.constant 0 : i32
    %c0_i32_0 = arith.constant 0 : i32
    %c0_i32_1 = arith.constant 0 : i32
    return %c0_i32, %c0_i32_0 : i32, i32
  }
  func.func @transform_2(%arg0: i32) -> (i32, i32) {
    %c0_i32 = arith.constant 0 : i32
    %c0_i32_0 = arith.constant 0 : i32
    %c0_i32_1 = arith.constant 0 : i32
    return %c0_i32, %c0_i32_0 : i32, i32
  }
  func.func @transform_3(%arg0: i32) -> (i32, i32) {
    %c0_i32 = arith.constant 0 : i32
    %c0_i32_0 = arith.constant 0 : i32
    %c0_i32_1 = arith.constant 0 : i32
    return %c0_i32, %c0_i32_0 : i32, i32
  }
  func.func @transform_4(%arg0: i32) -> (i32, i32) {
    %c0_i32 = arith.constant 0 : i32
    %c0_i32_0 = arith.constant 0 : i32
    %c0_i32_1 = arith.constant 0 : i32
    return %c0_i32, %c0_i32_0 : i32, i32
  }
  func.func @transform_5(%arg0: i32) -> (i32, i32) {
    %c0_i32 = arith.constant 0 : i32
    %c0_i32_0 = arith.constant 0 : i32
    %c0_i32_1 = arith.constant 0 : i32
    return %c0_i32, %c0_i32_0 : i32, i32
  }
  func.func @transform_6(%arg0: i32) -> (i32, i32) {
    %c0_i32 = arith.constant 0 : i32
    %c0_i32_0 = arith.constant 0 : i32
    %c0_i32_1 = arith.constant 0 : i32
    return %c0_i32, %c0_i32_0 : i32, i32
  }
  func.func @transform_7(%arg0: i32) -> (i32, i32) {
    %c0_i32 = arith.constant 0 : i32
    %c0_i32_0 = arith.constant 0 : i32
    %c0_i32_1 = arith.constant 0 : i32
    return %c0_i32, %c0_i32_0 : i32, i32
  }
  func.func @transform_8(%arg0: i32) -> (i32, i32, i32) {
    %c0_i32 = arith.constant 0 : i32
    %c0_i32_0 = arith.constant 0 : i32
    %c0_i32_1 = arith.constant 0 : i32
    return %c0_i32, %arg0, %c0_i32_0 : i32, i32, i32
  }
}

</mosaic_0001>

<bundles_post_ra>
// kernel: tpu_custom_call.1
= control target key start
LH: loop header
LB: loop body
LE: loop exit
PB: predicated region body
PF: predicated region fallthrough
CT: control target
= control target key end

     0   :  { %13 = vsyncpa [#allocation11], 0  ;;  %s1966_s0 = inlined_call_operand.hbm [shape: f32[8,8,16], index: 0, kind: input, shape index: {}]   ;;  %s1967_s1 = inlined_call_operand.hbm [shape: f32[16,1024], index: 1, kind: input, shape index: {}]   ;;  %s1968_s2 = inlined_call_operand.hbm [shape: f32[1,1024], index: 2, kind: input, shape index: {}]   ;;  %s1969_s3 = inlined_call_operand.hbm [shape: f32[128,512], index: 3, kind: input, shape index: {}]   ;;  %s1970_s4 = inlined_call_operand.hbm [shape: f32[128,512], index: 4, kind: input, shape index: {}]   ;;  %s1971_s5 = inlined_call_operand.hbm [shape: f32[128,128], index: 5, kind: input, shape index: {}]   ;;  %s1972_s6 = inlined_call_operand.hbm [shape: f32[128,128], index: 6, kind: input, shape index: {}]   ;;  %s1973_s7 = inlined_call_operand.vmem [shape: f32[1,128], index: 7, kind: input, shape index: {}]   ;;  %s1974_s8 = inlined_call_operand.hbm [shape: f32[8,8,128], index: 8, kind: output, shape index: {}]  }
   0x1   :  { %14 = vsyncpa [#allocation14], 0 }
   0x2   :  { %15 = vsyncpa [#allocation17], 0 }
   0x3   :  { %16 = vsyncpa [#allocation20], 0  ;;  %s35_s29 = sshll.u32 %s1967_s1, 4  ;;  %s36_s29 = int_to_ptr.hbm [resolvable:$true] %s35_s29 }
   0x4   :  { %17 = vsyncpa [#allocation12], 0  ;;  %s1650_s30 = smov [#allocation13]   ;;  %s59_s12 = sshll.u32 %s1969_s3, 4  ;;  %s60_s12 = int_to_ptr.hbm [resolvable:$true] %s59_s12 }
   0x5   :  { %s37_s9 = sshll.u32 %s1650_s30, 4  ;;  %s1651_s13 = smov 1024   ;;  %s38_s9 = int_to_ptr.vmem [resolvable:$true] %s37_s9 }
   0x6   :  { %s1652_s14 = smov 64   ;;  %s1653_s15 = smov [#allocation16]  }
   0x7   :  { %43 = dma.hbm_to_vmem [thread:$0]  %s36_s29, 2048, %s38_s9, [#allocation14], %s1651_s13, %s1651_s13, %s1652_s14  }
   0x8   :  { %s61_s16 = sshll.u32 %s1653_s15, 4  ;;  %s1654_s17 = smov 512   ;;  %s62_s16 = int_to_ptr.vmem [resolvable:$true] %s61_s16 }
   0x9   :  { %s1655_s18 = smov 32   ;;  %s85_s20 = sshll.u32 %s1971_s5, 4  ;;  %s86_s20 = int_to_ptr.hbm [resolvable:$true] %s85_s20 }
   0xa   :  { %67 = dma.hbm_to_vmem [thread:$0]  %s60_s12, 8192, %s62_s16, [#allocation17], %s1654_s17, %s1654_s17, %s1655_s18  }
   0xb   :  { %s1656_s21 = smov [#allocation19]   ;;  %s22_s24 = sshll.u32 %s1966_s0, 4  ;;  %s23_s24 = int_to_ptr.hbm [resolvable:$true] %s22_s24 }
   0xc   :  { %s87_s3 = sshll.u32 %s1656_s21, 4  ;;  %s1657_s25 = smov 128   ;;  %s88_s3 = int_to_ptr.vmem [resolvable:$true] %s87_s3 }
   0xd   :  { %s1658_s26 = smov 8   ;;  %s1659_s27 = smov [#allocation10]  }
   0xe   :  { %93 = dma.hbm_to_vmem [thread:$0]  %s86_s20, 2048, %s88_s3, [#allocation20], %s1657_s25, %s1657_s25, %s1658_s26  }
   0xf   :  { %s24_s28 = sshll.u32 %s1659_s27, 4  ;;  %s49_s5 = sshll.u32 %s1968_s2, 4  ;;  %s25_s28 = int_to_ptr.vmem [resolvable:$true] %s24_s28  ;;  %s50_s5 = int_to_ptr.hbm [resolvable:$true] %s49_s5 }
  0x10   :  { %30 = dma.hbm_to_vmem [thread:$0]  %s23_s24, 1024, %s25_s28, [#allocation11], %s1657_s25, %s1657_s25, %s1658_s26  }
  0x11   :  { %s72_s10 = sshll.u32 %s1970_s4, 4  ;;  %s1660_s11 = smov [#allocation15]   ;;  %s73_s10 = int_to_ptr.hbm [resolvable:$true] %s72_s10 }
  0x12   :  { %s51_s12 = sshll.u32 %s1660_s11, 4  ;;  %s1661_s13 = smov [#allocation18]   ;;  %s52_s12 = int_to_ptr.vmem [resolvable:$true] %s51_s12 }
  0x13   :  { %54 = dma.hbm_to_vmem [thread:$0]  %s50_s5, 128, %s52_s12, [#allocation14]  }
  0x14   :  { %s74_s14 = sshll.u32 %s1661_s13, 4  ;;  %s98_s2 = sshll.u32 %s1972_s6, 4  ;;  %s75_s14 = int_to_ptr.vmem [resolvable:$true] %s74_s14  ;;  %s99_s2 = int_to_ptr.hbm [resolvable:$true] %s98_s2 }
  0x15   :  { %80 = dma.hbm_to_vmem [thread:$0]  %s73_s10, 8192, %s75_s14, [#allocation17], %s1654_s17, %s1654_s17, %s1655_s18  }
  0x16   :  { %s1662_s1 = smov [#allocation21]  }
  0x17   :  { %s100_s19 = sshll.u32 %s1662_s1, 4  ;;  %s101_s19 = int_to_ptr.vmem [resolvable:$true] %s100_s19 }
  0x18   :  { %106 = dma.hbm_to_vmem [thread:$0]  %s99_s2, 2048, %s101_s19, [#allocation20], %s1657_s25, %s1657_s25, %s1658_s26  }
  0x19   :  { %1636 = dma.done.wait [#allocation11], 1024  }
  0x1a   :  { %1637 = vsyncadd [#allocation11], 4294966272 }
  0x1b   :  { %1638 = dma.done.wait [#allocation14], 2176  }
  0x1c   :  { %1639 = vsyncadd [#allocation14], 4294965120 }
  0x1d   :  { %1640 = dma.done.wait [#allocation17], 16384  }
  0x1e   :  { %1641 = vsyncadd [#allocation17], 4294950912 }
  0x1f   :  { %1642 = dma.done.wait [#allocation20], 4096  }
  0x20   :  { %1643 = vsyncadd [#allocation20], 4294963200  ;;  %v1663_v0 = vmov 0.0   ;;  %v155_v1 = vld [vmem:[#allocation13 + $0x50] sm:$0xff]  ;;  %v156_v2 = vld [vmem:[#allocation13 + $0x58] sm:$0xff]  ;;  %vm179_vm0 = vcmask 130048  }
  0x21   :  { %596 = vst [vmem:[#allocation6] sm:$0xff] %v1663_v0  ;;  %v147_v3 = vld [vmem:[#allocation13 + $0x10] sm:$0xff]  ;;  %300 = vmatpush.msra.mxu2 %v155_v1  ;;  %341 = vmatpush.msra.mxu3 %v156_v2  ;;  %v148_v4 = vld [vmem:[#allocation13 + $0x18] sm:$0xff]  ;;  %v1746_v5 = vld [vmem:[#allocation10] sm:$0xff]  ;;  %s1910_s4 = smov 0  }
  0x22   :  { %597 = vst [vmem:[#allocation7] sm:$0xff] %v1663_v0  ;;  %v159_v6 = vld [vmem:[#allocation13 + $0x70] sm:$0xff]  ;;  %v160_v7 = vld [vmem:[#allocation13 + $0x78] sm:$0xff]  ;;  %v153_v8 = vld [vmem:[#allocation13 + $0x40] sm:$0xff] }
  0x23   :  { %598 = vst [vmem:[#allocation8] sm:$0xff] %v1663_v0  ;;  %301 = vmatpush.msra.mxu2 %v147_v3  ;;  %342 = vmatpush.msra.mxu3 %v148_v4  ;;  %v154_v9 = vld [vmem:[#allocation13 + $0x48] sm:$0xff]  ;;  %v145_v10 = vld [vmem:[#allocation13] sm:$0xff]  ;;  %v151_v12 = vld [vmem:[#allocation13 + $0x30] sm:$0xff] }
  0x24   :  { %599 = vst [vmem:[#allocation9] sm:$0xff] %v1663_v0  ;;  %1274 = vmatmul.msk.f32.vlgmr.msra.gmra.mxu2 %vm179_vm0, %v1746_v5  ;;  %1282 = vmatmul.msk.f32.vlgmr.msra.gmra.mxu3 %vm179_vm0, %v1746_v5  ;;  %v146_v11 = vld [vmem:[#allocation13 + $0x8] sm:$0xff]  ;;  %v152_v13 = vld [vmem:[#allocation13 + $0x38] sm:$0xff]  ;;  %v157_v14 = vld [vmem:[#allocation13 + $0x60] sm:$0xff] }
  0x25   :  { %464 = vmatpush.msrb.mxu2 %v159_v6  ;;  %505 = vmatpush.msrb.mxu3 %v160_v7  ;;  %v158_v15 = vld [vmem:[#allocation13 + $0x68] sm:$0xff]  ;;  %v149_v17 = vld [vmem:[#allocation13 + $0x20] sm:$0xff]  ;;  %v139_v19 = vld [vmem:[#allocation10 + $0x10] sm:$0xff] }
  0x26   :  { %218 = vmatpush.msra.mxu0 %v153_v8  ;;  %259 = vmatpush.msra.mxu1 %v154_v9  ;;  %v138_v16 = vld [vmem:[#allocation10 + $0x8] sm:$0xff]  ;;  %v140_v20 = vld [vmem:[#allocation10 + $0x18] sm:$0xff]  ;;  %v141_v21 = vld [vmem:[#allocation10 + $0x20] sm:$0xff] }
  0x27   :  { %465 = vmatpush.msrb.mxu2 %v151_v12  ;;  %506 = vmatpush.msrb.mxu3 %v152_v13  ;;  %v150_v18 = vld [vmem:[#allocation13 + $0x28] sm:$0xff]  ;;  %v143_v23 = vld [vmem:[#allocation10 + $0x30] sm:$0xff]  ;;  %v144_v24 = vld [vmem:[#allocation10 + $0x38] sm:$0xff] }
  0x28   :  { %219 = vmatpush.msra.mxu0 %v145_v10  ;;  %260 = vmatpush.msra.mxu1 %v146_v11  ;;  %v142_v22 = vld [vmem:[#allocation10 + $0x28] sm:$0xff]  ;;  %v1818_v25 = vld [vmem:[#allocation15] sm:$0xff] }
  0x29   :  { %1258 = vmatmul.msk.f32.vlgmr.msra.gmra.mxu0 %vm179_vm0, %v1746_v5  ;;  %1266 = vmatmul.msk.f32.vlgmr.msra.gmra.mxu1 %vm179_vm0, %v1746_v5  ;;  %v1823_v26 = vperm.slane %v1818_v25, 0  ;;  %v1826_v27 = vperm.slane %v1818_v25, 1  ;;  %v1829_v28 = vperm.slane %v1818_v25, 2  ;;  %v1832_v29 = vperm.slane %v1818_v25, 3 }
  0x2a   :  { %382 = vmatpush.msrb.mxu0 %v157_v14  ;;  %423 = vmatpush.msrb.mxu1 %v158_v15 }
  0x2c   :  { %1275 = vmatmul.msk.f32.gmra.mxu2 %vm179_vm0, %v138_v16  ;;  %1283 = vmatmul.msk.f32.gmra.mxu3 %vm179_vm0, %v138_v16 }
  0x2d   :  { %383 = vmatpush.msrb.mxu0 %v149_v17  ;;  %424 = vmatpush.msrb.mxu1 %v150_v18 }
  0x31   :  { %1259 = vmatmul.msk.f32.gmra.mxu0 %vm179_vm0, %v138_v16  ;;  %1267 = vmatmul.msk.f32.gmra.mxu1 %vm179_vm0, %v138_v16 }
  0x34   :  { %1276 = vmatmul.msk.f32.gmra.mxu2 %vm179_vm0, %v139_v19  ;;  %1284 = vmatmul.msk.f32.gmra.mxu3 %vm179_vm0, %v139_v19 }
  0x39   :  { %1260 = vmatmul.msk.f32.gmra.mxu0 %vm179_vm0, %v139_v19  ;;  %1268 = vmatmul.msk.f32.gmra.mxu1 %vm179_vm0, %v139_v19 }
  0x3c   :  { %1277 = vmatmul.msk.f32.gmra.mxu2 %vm179_vm0, %v140_v20  ;;  %1285 = vmatmul.msk.f32.gmra.mxu3 %vm179_vm0, %v140_v20 }
  0x41   :  { %1261 = vmatmul.msk.f32.gmra.mxu0 %vm179_vm0, %v140_v20  ;;  %1269 = vmatmul.msk.f32.gmra.mxu1 %vm179_vm0, %v140_v20 }
  0x44   :  { %1278 = vmatmul.msk.f32.gmra.mxu2 %vm179_vm0, %v141_v21  ;;  %1286 = vmatmul.msk.f32.gmra.mxu3 %vm179_vm0, %v141_v21 }
  0x49   :  { %1262 = vmatmul.msk.f32.gmra.mxu0 %vm179_vm0, %v141_v21  ;;  %1270 = vmatmul.msk.f32.gmra.mxu1 %vm179_vm0, %v141_v21 }
  0x4c   :  { %1279 = vmatmul.msk.f32.gmra.mxu2 %vm179_vm0, %v142_v22  ;;  %1287 = vmatmul.msk.f32.gmra.mxu3 %vm179_vm0, %v142_v22 }
  0x51   :  { %1263 = vmatmul.msk.f32.gmra.mxu0 %vm179_vm0, %v142_v22  ;;  %1271 = vmatmul.msk.f32.gmra.mxu1 %vm179_vm0, %v142_v22 }
  0x54   :  { %1280 = vmatmul.msk.f32.gmra.mxu2 %vm179_vm0, %v143_v23  ;;  %1288 = vmatmul.msk.f32.gmra.mxu3 %vm179_vm0, %v143_v23 }
  0x59   :  { %1264 = vmatmul.msk.f32.gmra.mxu0 %vm179_vm0, %v143_v23  ;;  %1272 = vmatmul.msk.f32.gmra.mxu1 %vm179_vm0, %v143_v23 }
  0x5c   :  { %1281 = vmatmul.msk.f32.gmra.mxu2 %vm179_vm0, %v144_v24  ;;  %1289 = vmatmul.msk.f32.gmra.mxu3 %vm179_vm0, %v144_v24 }
  0x61   :  { %1265 = vmatmul.msk.f32.gmra.mxu0 %vm179_vm0, %v144_v24  ;;  %1273 = vmatmul.msk.f32.gmra.mxu1 %vm179_vm0, %v144_v24 }
  0x64   :  { %1306 = vmatmul.msk.f32.vlgmr.msrb.gmra.mxu2 %vm179_vm0, %v1746_v5  ;;  %1314 = vmatmul.msk.f32.vlgmr.msrb.gmra.mxu3 %vm179_vm0, %v1746_v5 }
  0x69   :  { %1290 = vmatmul.msk.f32.vlgmr.msrb.gmra.mxu0 %vm179_vm0, %v1746_v5  ;;  %1298 = vmatmul.msk.f32.vlgmr.msrb.gmra.mxu1 %vm179_vm0, %v1746_v5 }
  0x6c   :  { %1307 = vmatmul.msk.f32.gmra.mxu2 %vm179_vm0, %v138_v16  ;;  %1315 = vmatmul.msk.f32.gmra.mxu3 %vm179_vm0, %v138_v16 }
  0x71   :  { %1291 = vmatmul.msk.f32.gmra.mxu0 %vm179_vm0, %v138_v16  ;;  %1299 = vmatmul.msk.f32.gmra.mxu1 %vm179_vm0, %v138_v16 }
  0x74   :  { %1308 = vmatmul.msk.f32.gmra.mxu2 %vm179_vm0, %v139_v19  ;;  %1316 = vmatmul.msk.f32.gmra.mxu3 %vm179_vm0, %v139_v19 }
  0x79   :  { %1292 = vmatmul.msk.f32.gmra.mxu0 %vm179_vm0, %v139_v19  ;;  %1300 = vmatmul.msk.f32.gmra.mxu1 %vm179_vm0, %v139_v19 }
  0x7c   :  { %1309 = vmatmul.msk.f32.gmra.mxu2 %vm179_vm0, %v140_v20  ;;  %1317 = vmatmul.msk.f32.gmra.mxu3 %vm179_vm0, %v140_v20 }
  0x81   :  { %1293 = vmatmul.msk.f32.gmra.mxu0 %vm179_vm0, %v140_v20  ;;  %1301 = vmatmul.msk.f32.gmra.mxu1 %vm179_vm0, %v140_v20 }
  0x84   :  { %1310 = vmatmul.msk.f32.gmra.mxu2 %vm179_vm0, %v141_v21  ;;  %1318 = vmatmul.msk.f32.gmra.mxu3 %vm179_vm0, %v141_v21 }
  0x89   :  { %1294 = vmatmul.msk.f32.gmra.mxu0 %vm179_vm0, %v141_v21  ;;  %1302 = vmatmul.msk.f32.gmra.mxu1 %vm179_vm0, %v141_v21 }
  0x8c   :  { %1311 = vmatmul.msk.f32.gmra.mxu2 %vm179_vm0, %v142_v22  ;;  %1319 = vmatmul.msk.f32.gmra.mxu3 %vm179_vm0, %v142_v22 }
  0x91   :  { %1295 = vmatmul.msk.f32.gmra.mxu0 %vm179_vm0, %v142_v22  ;;  %1303 = vmatmul.msk.f32.gmra.mxu1 %vm179_vm0, %v142_v22 }
  0x94   :  { %1312 = vmatmul.msk.f32.gmra.mxu2 %vm179_vm0, %v143_v23  ;;  %1320 = vmatmul.msk.f32.gmra.mxu3 %vm179_vm0, %v143_v23 }
  0x99   :  { %1296 = vmatmul.msk.f32.gmra.mxu0 %vm179_vm0, %v143_v23  ;;  %1304 = vmatmul.msk.f32.gmra.mxu1 %vm179_vm0, %v143_v23 }
  0x9c   :  { %1313 = vmatmul.msk.f32.gmra.mxu2 %vm179_vm0, %v144_v24  ;;  %1321 = vmatmul.msk.f32.gmra.mxu3 %vm179_vm0, %v144_v24 }
  0xa1   :  { %1297 = vmatmul.msk.f32.gmra.mxu0 %vm179_vm0, %v144_v24  ;;  %1305 = vmatmul.msk.f32.gmra.mxu1 %vm179_vm0, %v144_v24 }
  0xa6   :  { %v221_v30 = vpop.f32.mrf.mxu0  ;;  %v262_v31 = vpop.f32.mrf.mxu1 }
  0xa7   :  { %v222_v32 = vadd.f32 %v221_v30, %v1823_v26  ;;  %v263_v33 = vadd.f32 %v262_v31, %v1826_v27  ;;  %v303_v34 = vpop.f32.mrf.mxu2  ;;  %v344_v35 = vpop.f32.mrf.mxu3 }
  0xa8   :  { %v304_v36 = vadd.f32 %v303_v34, %v1829_v28  ;;  %v345_v37 = vadd.f32 %v344_v35, %v1832_v29  ;;  %v1867_v35 = vperm.slane %v1818_v25, 4 }
  0xa9   :  { %532 = vst [vmem:[#allocation2] sm:$0xff] %v222_v32 }
  0xaa   :  { %533 = vst [vmem:[#allocation2 + $0x8] sm:$0xff] %v263_v33 }
  0xab   :  { %534 = vst [vmem:[#allocation2 + $0x10] sm:$0xff] %v304_v36  ;;  %v1870_v36 = vperm.slane %v1818_v25, 5 }
  0xac   :  { %535 = vst [vmem:[#allocation2 + $0x18] sm:$0xff] %v345_v37 }
  0xae   :  { %v224_v38 = vpop.f32.mrf.mxu0  ;;  %v265_v39 = vpop.f32.mrf.mxu1 }
  0xaf   :  { %v225_v40 = vadd.f32 %v224_v38, %v1823_v26  ;;  %v266_v41 = vadd.f32 %v265_v39, %v1826_v27  ;;  %v306_v42 = vpop.f32.mrf.mxu2  ;;  %v347_v43 = vpop.f32.mrf.mxu3 }
  0xb0   :  { %v307_v44 = vadd.f32 %v306_v42, %v1829_v28  ;;  %v348_v45 = vadd.f32 %v347_v43, %v1832_v29 }
  0xb1   :  { %536 = vst [vmem:[#allocation2 + $0x20] sm:$0xff] %v225_v40 }
  0xb2   :  { %537 = vst [vmem:[#allocation2 + $0x28] sm:$0xff] %v266_v41 }
  0xb3   :  { %538 = vst [vmem:[#allocation2 + $0x30] sm:$0xff] %v307_v44 }
  0xb4   :  { %539 = vst [vmem:[#allocation2 + $0x38] sm:$0xff] %v348_v45 }
  0xb6   :  { %v227_v46 = vpop.f32.mrf.mxu0  ;;  %v268_v47 = vpop.f32.mrf.mxu1 }
  0xb7   :  { %v228_v48 = vadd.f32 %v227_v46, %v1823_v26  ;;  %v269_v49 = vadd.f32 %v268_v47, %v1826_v27  ;;  %v309_v50 = vpop.f32.mrf.mxu2  ;;  %v350_v51 = vpop.f32.mrf.mxu3 }
  0xb8   :  { %v310_v52 = vadd.f32 %v309_v50, %v1829_v28  ;;  %v351_v53 = vadd.f32 %v350_v51, %v1832_v29 }
  0xb9   :  { %540 = vst [vmem:[#allocation2 + $0x40] sm:$0xff] %v228_v48 }
  0xba   :  { %541 = vst [vmem:[#allocation2 + $0x48] sm:$0xff] %v269_v49 }
  0xbb   :  { %542 = vst [vmem:[#allocation2 + $0x50] sm:$0xff] %v310_v52 }
  0xbc   :  { %543 = vst [vmem:[#allocation2 + $0x58] sm:$0xff] %v351_v53 }
  0xbe   :  { %v230_v54 = vpop.f32.mrf.mxu0  ;;  %v271_v55 = vpop.f32.mrf.mxu1 }
  0xbf   :  { %v231_v56 = vadd.f32 %v230_v54, %v1823_v26  ;;  %v272_v57 = vadd.f32 %v271_v55, %v1826_v27  ;;  %v312_v58 = vpop.f32.mrf.mxu2  ;;  %v353_v59 = vpop.f32.mrf.mxu3 }
  0xc0   :  { %v313_v60 = vadd.f32 %v312_v58, %v1829_v28  ;;  %v354_v61 = vadd.f32 %v353_v59, %v1832_v29 }
  0xc1   :  { %544 = vst [vmem:[#allocation2 + $0x60] sm:$0xff] %v231_v56 }
  0xc2   :  { %545 = vst [vmem:[#allocation2 + $0x68] sm:$0xff] %v272_v57 }
  0xc3   :  { %546 = vst [vmem:[#allocation2 + $0x70] sm:$0xff] %v313_v60 }
  0xc4   :  { %547 = vst [vmem:[#allocation2 + $0x78] sm:$0xff] %v354_v61 }
  0xc6   :  { %v233_v62 = vpop.f32.mrf.mxu0  ;;  %v274_v63 = vpop.f32.mrf.mxu1 }
  0xc7   :  { %v234_v0 = vadd.f32 %v233_v62, %v1823_v26  ;;  %v275_v1 = vadd.f32 %v274_v63, %v1826_v27  ;;  %v315_v2 = vpop.f32.mrf.mxu2  ;;  %v356_v3 = vpop.f32.mrf.mxu3 }
  0xc8   :  { %v316_v4 = vadd.f32 %v315_v2, %v1829_v28  ;;  %v357_v5 = vadd.f32 %v356_v3, %v1832_v29 }
  0xc9   :  { %548 = vst [vmem:[#allocation2 + $0x80] sm:$0xff] %v234_v0 }
  0xca   :  { %549 = vst [vmem:[#allocation2 + $0x88] sm:$0xff] %v275_v1 }
  0xcb   :  { %550 = vst [vmem:[#allocation2 + $0x90] sm:$0xff] %v316_v4 }
  0xcc   :  { %551 = vst [vmem:[#allocation2 + $0x98] sm:$0xff] %v357_v5 }
  0xce   :  { %v236_v6 = vpop.f32.mrf.mxu0  ;;  %v277_v7 = vpop.f32.mrf.mxu1 }
  0xcf   :  { %v237_v8 = vadd.f32 %v236_v6, %v1823_v26  ;;  %v278_v9 = vadd.f32 %v277_v7, %v1826_v27  ;;  %v318_v10 = vpop.f32.mrf.mxu2  ;;  %v359_v11 = vpop.f32.mrf.mxu3 }
  0xd0   :  { %v319_v12 = vadd.f32 %v318_v10, %v1829_v28  ;;  %v360_v13 = vadd.f32 %v359_v11, %v1832_v29 }
  0xd1   :  { %552 = vst [vmem:[#allocation2 + $0xa0] sm:$0xff] %v237_v8 }
  0xd2   :  { %553 = vst [vmem:[#allocation2 + $0xa8] sm:$0xff] %v278_v9 }
  0xd3   :  { %554 = vst [vmem:[#allocation2 + $0xb0] sm:$0xff] %v319_v12 }
  0xd4   :  { %555 = vst [vmem:[#allocation2 + $0xb8] sm:$0xff] %v360_v13 }
  0xd6   :  { %v239_v14 = vpop.f32.mrf.mxu0  ;;  %v280_v15 = vpop.f32.mrf.mxu1 }
  0xd7   :  { %v240_v16 = vadd.f32 %v239_v14, %v1823_v26  ;;  %v281_v17 = vadd.f32 %v280_v15, %v1826_v27  ;;  %v321_v18 = vpop.f32.mrf.mxu2  ;;  %v362_v19 = vpop.f32.mrf.mxu3 }
  0xd8   :  { %v322_v20 = vadd.f32 %v321_v18, %v1829_v28  ;;  %v363_v21 = vadd.f32 %v362_v19, %v1832_v29 }
  0xd9   :  { %556 = vst [vmem:[#allocation2 + $0xc0] sm:$0xff] %v240_v16 }
  0xda   :  { %557 = vst [vmem:[#allocation2 + $0xc8] sm:$0xff] %v281_v17 }
  0xdb   :  { %558 = vst [vmem:[#allocation2 + $0xd0] sm:$0xff] %v322_v20 }
  0xdc   :  { %559 = vst [vmem:[#allocation2 + $0xd8] sm:$0xff] %v363_v21 }
  0xde   :  { %v242_v22 = vpop.f32.mrf.mxu0  ;;  %v283_v23 = vpop.f32.mrf.mxu1 }
  0xdf   :  { %v243_v24 = vadd.f32 %v242_v22, %v1823_v26  ;;  %v284_v30 = vadd.f32 %v283_v23, %v1826_v27  ;;  %v324_v31 = vpop.f32.mrf.mxu2  ;;  %v365_v32 = vpop.f32.mrf.mxu3  ;;  %v1873_v26 = vperm.slane %v1818_v25, 6  ;;  %v1876_v27 = vperm.slane %v1818_v25, 7 }
  0xe0   :  { %v325_v33 = vadd.f32 %v324_v31, %v1829_v28  ;;  %v366_v34 = vadd.f32 %v365_v32, %v1832_v29 }
  0xe1   :  { %560 = vst [vmem:[#allocation2 + $0xe0] sm:$0xff] %v243_v24 }
  0xe2   :  { %561 = vst [vmem:[#allocation2 + $0xe8] sm:$0xff] %v284_v30 }
  0xe3   :  { %562 = vst [vmem:[#allocation2 + $0xf0] sm:$0xff] %v325_v33 }
  0xe4   :  { %563 = vst [vmem:[#allocation2 + $0xf8] sm:$0xff] %v366_v34 }
  0xe6   :  { %v385_v37 = vpop.f32.mrf.mxu0  ;;  %v426_v28 = vpop.f32.mrf.mxu1 }
  0xe7   :  { %v386_v29 = vadd.f32 %v385_v37, %v1867_v35  ;;  %v427_v38 = vadd.f32 %v426_v28, %v1870_v36  ;;  %v467_v39 = vpop.f32.mrf.mxu2  ;;  %v508_v40 = vpop.f32.mrf.mxu3 }
  0xe8   :  { %v468_v41 = vadd.f32 %v467_v39, %v1873_v26  ;;  %v509_v42 = vadd.f32 %v508_v40, %v1876_v27 }
  0xe9   :  { %564 = vst [vmem:[#allocation3] sm:$0xff] %v386_v29 }
  0xea   :  { %565 = vst [vmem:[#allocation3 + $0x8] sm:$0xff] %v427_v38 }
  0xeb   :  { %566 = vst [vmem:[#allocation3 + $0x10] sm:$0xff] %v468_v41 }
  0xec   :  { %567 = vst [vmem:[#allocation3 + $0x18] sm:$0xff] %v509_v42 }
  0xee   :  { %v388_v43 = vpop.f32.mrf.mxu0  ;;  %v429_v44 = vpop.f32.mrf.mxu1 }
  0xef   :  { %v389_v25 = vadd.f32 %v388_v43, %v1867_v35  ;;  %v430_v45 = vadd.f32 %v429_v44, %v1870_v36  ;;  %v470_v46 = vpop.f32.mrf.mxu2  ;;  %v511_v47 = vpop.f32.mrf.mxu3 }
  0xf0   :  { %v471_v48 = vadd.f32 %v470_v46, %v1873_v26  ;;  %v512_v49 = vadd.f32 %v511_v47, %v1876_v27 }
  0xf1   :  { %568 = vst [vmem:[#allocation3 + $0x20] sm:$0xff] %v389_v25 }
  0xf2   :  { %569 = vst [vmem:[#allocation3 + $0x28] sm:$0xff] %v430_v45 }
  0xf3   :  { %570 = vst [vmem:[#allocation3 + $0x30] sm:$0xff] %v471_v48 }
  0xf4   :  { %571 = vst [vmem:[#allocation3 + $0x38] sm:$0xff] %v512_v49 }
  0xf6   :  { %v391_v50 = vpop.f32.mrf.mxu0  ;;  %v432_v51 = vpop.f32.mrf.mxu1 }
  0xf7   :  { %v392_v52 = vadd.f32 %v391_v50, %v1867_v35  ;;  %v433_v53 = vadd.f32 %v432_v51, %v1870_v36  ;;  %v473_v54 = vpop.f32.mrf.mxu2  ;;  %v514_v55 = vpop.f32.mrf.mxu3 }
  0xf8   :  { %v474_v56 = vadd.f32 %v473_v54, %v1873_v26  ;;  %v515_v57 = vadd.f32 %v514_v55, %v1876_v27 }
  0xf9   :  { %572 = vst [vmem:[#allocation3 + $0x40] sm:$0xff] %v392_v52 }
  0xfa   :  { %573 = vst [vmem:[#allocation3 + $0x48] sm:$0xff] %v433_v53 }
  0xfb   :  { %574 = vst [vmem:[#allocation3 + $0x50] sm:$0xff] %v474_v56 }
  0xfc   :  { %575 = vst [vmem:[#allocation3 + $0x58] sm:$0xff] %v515_v57 }
  0xfe   :  { %v394_v58 = vpop.f32.mrf.mxu0  ;;  %v435_v59 = vpop.f32.mrf.mxu1 }
  0xff   :  { %v395_v60 = vadd.f32 %v394_v58, %v1867_v35  ;;  %v436_v61 = vadd.f32 %v435_v59, %v1870_v36  ;;  %v476_v62 = vpop.f32.mrf.mxu2  ;;  %v517_v63 = vpop.f32.mrf.mxu3 }
 0x100   :  { %v477_v0 = vadd.f32 %v476_v62, %v1873_v26  ;;  %v518_v1 = vadd.f32 %v517_v63, %v1876_v27 }
 0x101   :  { %576 = vst [vmem:[#allocation3 + $0x60] sm:$0xff] %v395_v60 }
 0x102   :  { %577 = vst [vmem:[#allocation3 + $0x68] sm:$0xff] %v436_v61 }
 0x103   :  { %578 = vst [vmem:[#allocation3 + $0x70] sm:$0xff] %v477_v0 }
 0x104   :  { %579 = vst [vmem:[#allocation3 + $0x78] sm:$0xff] %v518_v1 }
 0x106   :  { %v397_v2 = vpop.f32.mrf.mxu0  ;;  %v438_v3 = vpop.f32.mrf.mxu1 }
 0x107   :  { %v398_v4 = vadd.f32 %v397_v2, %v1867_v35  ;;  %v439_v5 = vadd.f32 %v438_v3, %v1870_v36  ;;  %v479_v6 = vpop.f32.mrf.mxu2  ;;  %v520_v7 = vpop.f32.mrf.mxu3 }
 0x108   :  { %v480_v8 = vadd.f32 %v479_v6, %v1873_v26  ;;  %v521_v9 = vadd.f32 %v520_v7, %v1876_v27 }
 0x109   :  { %580 = vst [vmem:[#allocation3 + $0x80] sm:$0xff] %v398_v4 }
 0x10a   :  { %581 = vst [vmem:[#allocation3 + $0x88] sm:$0xff] %v439_v5 }
 0x10b   :  { %582 = vst [vmem:[#allocation3 + $0x90] sm:$0xff] %v480_v8 }
 0x10c   :  { %583 = vst [vmem:[#allocation3 + $0x98] sm:$0xff] %v521_v9 }
 0x10e   :  { %v400_v10 = vpop.f32.mrf.mxu0  ;;  %v441_v11 = vpop.f32.mrf.mxu1 }
 0x10f   :  { %v401_v12 = vadd.f32 %v400_v10, %v1867_v35  ;;  %v442_v13 = vadd.f32 %v441_v11, %v1870_v36  ;;  %v482_v14 = vpop.f32.mrf.mxu2  ;;  %v523_v15 = vpop.f32.mrf.mxu3 }
 0x110   :  { %v483_v16 = vadd.f32 %v482_v14, %v1873_v26  ;;  %v524_v17 = vadd.f32 %v523_v15, %v1876_v27 }
 0x111   :  { %584 = vst [vmem:[#allocation3 + $0xa0] sm:$0xff] %v401_v12 }
 0x112   :  { %585 = vst [vmem:[#allocation3 + $0xa8] sm:$0xff] %v442_v13 }
 0x113   :  { %586 = vst [vmem:[#allocation3 + $0xb0] sm:$0xff] %v483_v16 }
 0x114   :  { %587 = vst [vmem:[#allocation3 + $0xb8] sm:$0xff] %v524_v17 }
 0x116   :  { %v403_v18 = vpop.f32.mrf.mxu0  ;;  %v444_v19 = vpop.f32.mrf.mxu1 }
 0x117   :  { %v404_v20 = vadd.f32 %v403_v18, %v1867_v35  ;;  %v445_v21 = vadd.f32 %v444_v19, %v1870_v36  ;;  %v485_v22 = vpop.f32.mrf.mxu2  ;;  %v526_v23 = vpop.f32.mrf.mxu3 }
 0x118   :  { %v486_v24 = vadd.f32 %v485_v22, %v1873_v26  ;;  %v527_v30 = vadd.f32 %v526_v23, %v1876_v27 }
 0x119   :  { %588 = vst [vmem:[#allocation3 + $0xc0] sm:$0xff] %v404_v20 }
 0x11a   :  { %589 = vst [vmem:[#allocation3 + $0xc8] sm:$0xff] %v445_v21 }
 0x11b   :  { %590 = vst [vmem:[#allocation3 + $0xd0] sm:$0xff] %v486_v24 }
 0x11c   :  { %591 = vst [vmem:[#allocation3 + $0xd8] sm:$0xff] %v527_v30 }
 0x11e   :  { %v406_v31 = vpop.f32.mrf.mxu0  ;;  %v447_v32 = vpop.f32.mrf.mxu1 }
 0x11f   :  { %v407_v33 = vadd.f32 %v406_v31, %v1867_v35  ;;  %v448_v34 = vadd.f32 %v447_v32, %v1870_v36  ;;  %v488_v37 = vpop.f32.mrf.mxu2  ;;  %v529_v28 = vpop.f32.mrf.mxu3 }
 0x120   :  { %v489_v29 = vadd.f32 %v488_v37, %v1873_v26  ;;  %v530_v38 = vadd.f32 %v529_v28, %v1876_v27 }
 0x121   :  { %592 = vst [vmem:[#allocation3 + $0xe0] sm:$0xff] %v407_v33 }
 0x122   :  { %593 = vst [vmem:[#allocation3 + $0xe8] sm:$0xff] %v448_v34 }
 0x123   :  { %594 = vst [vmem:[#allocation3 + $0xf0] sm:$0xff] %v489_v29 }
 0x124   :  { %595 = vst [vmem:[#allocation3 + $0xf8] sm:$0xff] %v530_v38 }
 0x125 LB: > { %v675_v35 = vld [vmem:[#allocation16 + $0x1e0] sm:$0xff]  ;;  %v676_v39 = vld [vmem:[#allocation16 + $0x1e8] sm:$0xff]  ;;  %v678_v36 = vld [vmem:[#allocation16 + $0x1f8] sm:$0xff]  ;;  %s1334_s6 = sshll.u32 %s1648_s4, 5  ;;  %s606_s18 = ssub.s32 7, %s1648_s4  ;;  %s1648_s4 = sphi %s1910_s4, %s605_s4  }
 0x126   : > { %679 = vmatpush.msra.mxu0 %v675_v35  ;;  %699 = vmatpush.msra.mxu1 %v676_v39  ;;  %v671_v40 = vld [vmem:[#allocation16 + $0x1c0] sm:$0xff]  ;;  %v672_v26 = vld [vmem:[#allocation16 + $0x1c8] sm:$0xff]  ;;  %v674_v41 = vld [vmem:[#allocation16 + $0x1d8] sm:$0xff]  ;;  %s1922_s17 = scalar_lea.vmem [#allocation2], %s1334_s6  ;;  %s1335_s20 = sshll.u32 %s606_s18, 5 }
 0x127   : > { %739 = vmatpush.msra.mxu3 %v678_v36  ;;  %v667_v27 = vld [vmem:[#allocation16 + $0x1a0] sm:$0xff]  ;;  %v668_v42 = vld [vmem:[#allocation16 + $0x1a8] sm:$0xff]  ;;  %v670_v43 = vld [vmem:[#allocation16 + $0x1b8] sm:$0xff]  ;;  %s1931_s21 = scalar_lea.vmem [#allocation3], %s1335_s20  ;;  %s1327_s3 = sshll.u32 %s1648_s4, 3 }
 0x128   : > { %680 = vmatpush.msra.mxu0 %v671_v40  ;;  %700 = vmatpush.msra.mxu1 %v672_v26  ;;  %v663_v44 = vld [vmem:[#allocation16 + $0x180] sm:$0xff]  ;;  %v664_v25 = vld [vmem:[#allocation16 + $0x188] sm:$0xff]  ;;  %v666_v45 = vld [vmem:[#allocation16 + $0x198] sm:$0xff]  ;;  %s830_s22 = scalar_lea.vmem [#allocation4], %s1327_s3  ;;  %s1333_s23 = sshll.u32 %s606_s18, 3 }
 0x129   : > { %740 = vmatpush.msra.mxu3 %v674_v41  ;;  %v659_v46 = vld [vmem:[#allocation16 + $0x160] sm:$0xff]  ;;  %v660_v47 = vld [vmem:[#allocation16 + $0x168] sm:$0xff]  ;;  %v662_v48 = vld [vmem:[#allocation16 + $0x178] sm:$0xff]  ;;  %s1055_s24 = scalar_lea.vmem [#allocation5], %s1333_s23  ;;  %s605_s4 = sadd.s32 1, %s1648_s4  }
 0x12a   : > { %681 = vmatpush.msra.mxu0 %v667_v27  ;;  %701 = vmatpush.msra.mxu1 %v668_v42  ;;  %v655_v49 = vld [vmem:[#allocation16 + $0x140] sm:$0xff]  ;;  %v656_v50 = vld [vmem:[#allocation16 + $0x148] sm:$0xff]  ;;  %v677_v51 = vld [vmem:[#allocation16 + $0x1f0] sm:$0xff]  ;;  %p602_p0 = scmp.ge.s32.totalorder %s605_s4, 8  }
 0x12b   : > { %741 = vmatpush.msra.mxu3 %v670_v43  ;;  %v658_v52 = vld [vmem:[#allocation16 + $0x158] sm:$0xff]  ;;  %v673_v53 = vld [vmem:[#allocation16 + $0x1d0] sm:$0xff]  ;;  %v651_v54 = vld [vmem:[#allocation16 + $0x120] sm:$0xff]  ;;  %719 = vmatpush.msra.mxu2 %v677_v51  ;;  %s1229_s0 = sshll.u32 (%p602_p0), %s1974_s8, 4  ;;  %s1230_s0 = int_to_ptr.hbm [resolvable:$true] %s1229_s0 }
 0x12c   : > { %682 = vmatpush.msra.mxu0 %v663_v44  ;;  %702 = vmatpush.msra.mxu1 %v664_v25  ;;  %v652_v55 = vld [vmem:[#allocation16 + $0x128] sm:$0xff]  ;;  %v654_v56 = vld [vmem:[#allocation16 + $0x138] sm:$0xff]  ;;  %v669_v57 = vld [vmem:[#allocation16 + $0x1b0] sm:$0xff] }
 0x12d   : > { %742 = vmatpush.msra.mxu3 %v666_v45  ;;  %v647_v58 = vld [vmem:[#allocation16 + $0x100] sm:$0xff]  ;;  %v648_v59 = vld [vmem:[#allocation16 + $0x108] sm:$0xff]  ;;  %720 = vmatpush.msra.mxu2 %v673_v53  ;;  %v650_v60 = vld [vmem:[#allocation16 + $0x118] sm:$0xff] }
 0x12e   : > { %683 = vmatpush.msra.mxu0 %v659_v46  ;;  %703 = vmatpush.msra.mxu1 %v660_v47  ;;  %v665_v61 = vld [vmem:[#allocation16 + $0x190] sm:$0xff]  ;;  %v643_v62 = vld [vmem:[#allocation16 + $0xe0] sm:$0xff]  ;;  %v644_v63 = vld [vmem:[#allocation16 + $0xe8] sm:$0xff] }
 0x12f   : > { %743 = vmatpush.msra.mxu3 %v662_v48  ;;  %721 = vmatpush.msra.mxu2 %v669_v57  ;;  %v646_v0 = vld [vmem:[#allocation16 + $0xf8] sm:$0xff]  ;;  %v661_v1 = vld [vmem:[#allocation16 + $0x170] sm:$0xff]  ;;  %v639_v2 = vld [vmem:[#allocation16 + $0xc0] sm:$0xff] }
 0x130   : > { %684 = vmatpush.msra.mxu0 %v655_v49  ;;  %704 = vmatpush.msra.mxu1 %v656_v50  ;;  %v640_v3 = vld [vmem:[#allocation16 + $0xc8] sm:$0xff]  ;;  %v642_v4 = vld [vmem:[#allocation16 + $0xd8] sm:$0xff]  ;;  %v657_v5 = vld [vmem:[#allocation16 + $0x150] sm:$0xff] }
 0x131   : > { %744 = vmatpush.msra.mxu3 %v658_v52  ;;  %722 = vmatpush.msra.mxu2 %v665_v61  ;;  %v635_v6 = vld [vmem:[#allocation16 + $0xa0] sm:$0xff]  ;;  %v636_v7 = vld [vmem:[#allocation16 + $0xa8] sm:$0xff]  ;;  %v638_v8 = vld [vmem:[#allocation16 + $0xb8] sm:$0xff] }
 0x132   : > { %685 = vmatpush.msra.mxu0 %v651_v54  ;;  %705 = vmatpush.msra.mxu1 %v652_v55  ;;  %v653_v9 = vld [vmem:[#allocation16 + $0x130] sm:$0xff]  ;;  %v631_v10 = vld [vmem:[#allocation16 + $0x80] sm:$0xff]  ;;  %v632_v11 = vld [vmem:[#allocation16 + $0x88] sm:$0xff] }
 0x133   : > { %745 = vmatpush.msra.mxu3 %v654_v56  ;;  %723 = vmatpush.msra.mxu2 %v661_v1  ;;  %v634_v12 = vld [vmem:[#allocation16 + $0x98] sm:$0xff]  ;;  %v649_v13 = vld [vmem:[#allocation16 + $0x110] sm:$0xff]  ;;  %v627_v14 = vld [vmem:[#allocation16 + $0x60] sm:$0xff] }
 0x134   : > { %686 = vmatpush.msra.mxu0 %v647_v58  ;;  %706 = vmatpush.msra.mxu1 %v648_v59  ;;  %v628_v15 = vld [vmem:[#allocation16 + $0x68] sm:$0xff]  ;;  %v630_v16 = vld [vmem:[#allocation16 + $0x78] sm:$0xff]  ;;  %v645_v17 = vld [vmem:[#allocation16 + $0xf0] sm:$0xff] }
 0x135   : > { %746 = vmatpush.msra.mxu3 %v650_v60  ;;  %724 = vmatpush.msra.mxu2 %v657_v5  ;;  %v623_v18 = vld [vmem:[#allocation16 + $0x40] sm:$0xff]  ;;  %v624_v19 = vld [vmem:[#allocation16 + $0x48] sm:$0xff]  ;;  %v626_v20 = vld [vmem:[#allocation16 + $0x58] sm:$0xff] }
 0x136   : > { %687 = vmatpush.msra.mxu0 %v643_v62  ;;  %707 = vmatpush.msra.mxu1 %v644_v63  ;;  %v641_v21 = vld [vmem:[#allocation16 + $0xd0] sm:$0xff]  ;;  %v619_v22 = vld [vmem:[#allocation16 + $0x20] sm:$0xff]  ;;  %v620_v23 = vld [vmem:[#allocation16 + $0x28] sm:$0xff] }
 0x137   : > { %747 = vmatpush.msra.mxu3 %v646_v0  ;;  %725 = vmatpush.msra.mxu2 %v653_v9  ;;  %v622_v24 = vld [vmem:[#allocation16 + $0x38] sm:$0xff]  ;;  %v637_v30 = vld [vmem:[#allocation16 + $0xb0] sm:$0xff]  ;;  %v615_v31 = vld [vmem:[#allocation16] sm:$0xff] }
 0x138   : > { %688 = vmatpush.msra.mxu0 %v639_v2  ;;  %708 = vmatpush.msra.mxu1 %v640_v3  ;;  %v616_v32 = vld [vmem:[#allocation16 + $0x8] sm:$0xff]  ;;  %v618_v33 = vld [vmem:[#allocation16 + $0x18] sm:$0xff]  ;;  %v900_v34 = vld [vmem:[#allocation18 + $0x1e0] sm:$0xff] }
 0x139   : > { %748 = vmatpush.msra.mxu3 %v642_v4  ;;  %726 = vmatpush.msra.mxu2 %v649_v13  ;;  %v901_v37 = vld [vmem:[#allocation18 + $0x1e8] sm:$0xff]  ;;  %v903_v28 = vld [vmem:[#allocation18 + $0x1f8] sm:$0xff]  ;;  %v896_v29 = vld [vmem:[#allocation18 + $0x1c0] sm:$0xff] }
 0x13a   : > { %689 = vmatpush.msra.mxu0 %v635_v6  ;;  %709 = vmatpush.msra.mxu1 %v636_v7  ;;  %v633_v38 = vld [vmem:[#allocation16 + $0x90] sm:$0xff]  ;;  %v897_v35 = vld [vmem:[#allocation18 + $0x1c8] sm:$0xff]  ;;  %v899_v39 = vld [vmem:[#allocation18 + $0x1d8] sm:$0xff] }
 0x13b   : > { %749 = vmatpush.msra.mxu3 %v638_v8  ;;  %727 = vmatpush.msra.mxu2 %v645_v17  ;;  %v892_v36 = vld [vmem:[#allocation18 + $0x1a0] sm:$0xff]  ;;  %v629_v40 = vld [vmem:[#allocation16 + $0x70] sm:$0xff]  ;;  %v893_v26 = vld [vmem:[#allocation18 + $0x1a8] sm:$0xff] }
 0x13c   : > { %690 = vmatpush.msra.mxu0 %v631_v10  ;;  %710 = vmatpush.msra.mxu1 %v632_v11  ;;  %v895_v41 = vld [vmem:[#allocation18 + $0x1b8] sm:$0xff]  ;;  %v888_v27 = vld [vmem:[#allocation18 + $0x180] sm:$0xff]  ;;  %v889_v43 = vld [vmem:[#allocation18 + $0x188] sm:$0xff] }
 0x13d   : > { %750 = vmatpush.msra.mxu3 %v634_v12  ;;  %728 = vmatpush.msra.mxu2 %v641_v21  ;;  %v1915_v42 = vld [vmem:[#allocation6] sm:$0xff]  ;;  %v884_v25 = vld [vmem:[#allocation18 + $0x160] sm:$0xff]  ;;  %v625_v45 = vld [vmem:[#allocation16 + $0x50] sm:$0xff] }
 0x13e   : > { %691 = vmatpush.msra.mxu0 %v627_v14  ;;  %711 = vmatpush.msra.mxu1 %v628_v15  ;;  %v891_v44 = vld [vmem:[#allocation18 + $0x198] sm:$0xff]  ;;  %v885_v46 = vld [vmem:[#allocation18 + $0x168] sm:$0xff]  ;;  %v621_v48 = vld [vmem:[#allocation16 + $0x30] sm:$0xff] }
 0x13f   : > { %751 = vmatpush.msra.mxu3 %v630_v16  ;;  %729 = vmatpush.msra.mxu2 %v637_v30  ;;  %v887_v47 = vld [vmem:[#allocation18 + $0x178] sm:$0xff]  ;;  %v880_v49 = vld [vmem:[#allocation18 + $0x140] sm:$0xff]  ;;  %v881_v50 = vld [vmem:[#allocation18 + $0x148] sm:$0xff] }
 0x140   : > { %692 = vmatpush.msra.mxu0 %v623_v18  ;;  %712 = vmatpush.msra.mxu1 %v624_v19  ;;  %v883_v51 = vld [vmem:[#allocation18 + $0x158] sm:$0xff]  ;;  %v617_v52 = vld [vmem:[#allocation16 + $0x10] sm:$0xff]  ;;  %v876_v53 = vld [vmem:[#allocation18 + $0x120] sm:$0xff] }
 0x141   : > { %752 = vmatpush.msra.mxu3 %v626_v20  ;;  %730 = vmatpush.msra.mxu2 %v633_v38  ;;  %v877_v54 = vld [vmem:[#allocation18 + $0x128] sm:$0xff]  ;;  %v879_v55 = vld [vmem:[#allocation18 + $0x138] sm:$0xff]  ;;  %v902_v56 = vld [vmem:[#allocation18 + $0x1f0] sm:$0xff] }
 0x142   : > { %693 = vmatpush.msra.mxu0 %v619_v22  ;;  %713 = vmatpush.msra.mxu1 %v620_v23  ;;  %v872_v57 = vld [vmem:[#allocation18 + $0x100] sm:$0xff]  ;;  %v873_v58 = vld [vmem:[#allocation18 + $0x108] sm:$0xff]  ;;  %v875_v59 = vld [vmem:[#allocation18 + $0x118] sm:$0xff] }
 0x143   : > { %753 = vmatpush.msra.mxu3 %v622_v24  ;;  %731 = vmatpush.msra.mxu2 %v629_v40  ;;  %v898_v60 = vld [vmem:[#allocation18 + $0x1d0] sm:$0xff]  ;;  %v868_v61 = vld [vmem:[#allocation18 + $0xe0] sm:$0xff]  ;;  %v869_v62 = vld [vmem:[#allocation18 + $0xe8] sm:$0xff] }
 0x144   : > { %694 = vmatpush.msra.mxu0 %v615_v31  ;;  %714 = vmatpush.msra.mxu1 %v616_v32  ;;  %v871_v63 = vld [vmem:[#allocation18 + $0xf8] sm:$0xff]  ;;  %v864_v0 = vld [vmem:[#allocation18 + $0xc0] sm:$0xff]  ;;  %v894_v1 = vld [vmem:[#allocation18 + $0x1b0] sm:$0xff] }
 0x145   : > { %754 = vmatpush.msra.mxu3 %v618_v33  ;;  %715 = vmatmul.f32.vlgmr.msra.gmra.mxu1 %v1915_v42  ;;  %v865_v2 = vld [vmem:[#allocation18 + $0xc8] sm:$0xff]  ;;  %v867_v3 = vld [vmem:[#allocation18 + $0xd8] sm:$0xff]  ;;  %v860_v4 = vld [vmem:[#allocation18 + $0xa0] sm:$0xff] }
 0x146   : > { %904 = vmatpush.msrb.mxu0 %v900_v34  ;;  %924 = vmatpush.msrb.mxu1 %v901_v37  ;;  %v890_v5 = vld [vmem:[#allocation18 + $0x190] sm:$0xff]  ;;  %v861_v6 = vld [vmem:[#allocation18 + $0xa8] sm:$0xff]  ;;  %v863_v7 = vld [vmem:[#allocation18 + $0xb8] sm:$0xff] }
 0x147   : > { %964 = vmatpush.msrb.mxu3 %v903_v28  ;;  %732 = vmatpush.msra.mxu2 %v625_v45  ;;  %v856_v8 = vld [vmem:[#allocation18 + $0x80] sm:$0xff]  ;;  %v886_v9 = vld [vmem:[#allocation18 + $0x170] sm:$0xff]  ;;  %v857_v10 = vld [vmem:[#allocation18 + $0x88] sm:$0xff] }
 0x148   : > { %905 = vmatpush.msrb.mxu0 %v896_v29  ;;  %925 = vmatpush.msrb.mxu1 %v897_v35  ;;  %v859_v11 = vld [vmem:[#allocation18 + $0x98] sm:$0xff]  ;;  %v852_v12 = vld [vmem:[#allocation18 + $0x60] sm:$0xff]  ;;  %v853_v13 = vld [vmem:[#allocation18 + $0x68] sm:$0xff] }
 0x149   : > { %965 = vmatpush.msrb.mxu3 %v899_v39  ;;  %695 = vmatmul.f32.vlgmr.msra.gmra.mxu0 %v1915_v42  ;;  %v855_v14 = vld [vmem:[#allocation18 + $0x78] sm:$0xff]  ;;  %v882_v15 = vld [vmem:[#allocation18 + $0x150] sm:$0xff]  ;;  %v848_v16 = vld [vmem:[#allocation18 + $0x40] sm:$0xff] }
 0x14a   : > { %906 = vmatpush.msrb.mxu0 %v892_v36  ;;  %926 = vmatpush.msrb.mxu1 %v893_v26  ;;  %v849_v17 = vld [vmem:[#allocation18 + $0x48] sm:$0xff]  ;;  %v851_v18 = vld [vmem:[#allocation18 + $0x58] sm:$0xff]  ;;  %v878_v19 = vld [vmem:[#allocation18 + $0x130] sm:$0xff] }
 0x14b   : > { %966 = vmatpush.msrb.mxu3 %v895_v41  ;;  %733 = vmatpush.msra.mxu2 %v621_v48  ;;  %v844_v20 = vld [vmem:[#allocation18 + $0x20] sm:$0xff]  ;;  %v845_v21 = vld [vmem:[#allocation18 + $0x28] sm:$0xff]  ;;  %v847_v22 = vld [vmem:[#allocation18 + $0x38] sm:$0xff] }
 0x14c   : > { %907 = vmatpush.msrb.mxu0 %v888_v27  ;;  %927 = vmatpush.msrb.mxu1 %v889_v43  ;;  %v874_v23 = vld [vmem:[#allocation18 + $0x110] sm:$0xff]  ;;  %v840_v24 = vld [vmem:[#allocation18] sm:$0xff]  ;;  %v841_v30 = vld [vmem:[#allocation18 + $0x8] sm:$0xff] }
 0x14d   : > { %967 = vmatpush.msrb.mxu3 %v891_v44  ;;  %734 = vmatpush.msra.mxu2 %v617_v52  ;;  %v843_v31 = vld [vmem:[#allocation18 + $0x18] sm:$0xff]  ;;  %v839_v32 = vld [vmem:[#allocation8] sm:$0xff]  ;;  %v870_v33 = vld [vmem:[#allocation18 + $0xf0] sm:$0xff] }
 0x14e   : > { %908 = vmatpush.msrb.mxu0 %v884_v25  ;;  %928 = vmatpush.msrb.mxu1 %v885_v46  ;;  %v866_v34 = vld [vmem:[#allocation18 + $0xd0] sm:$0xff]  ;;  %v611_v36 = vld [vmem:[%s1922_s17 + $0x8] sm:$0xff]  ;;  %v610_v41 = vld [vmem:[%s1922_s17] sm:$0xff] }
 0x14f   : > { %968 = vmatpush.msrb.mxu3 %v887_v47  ;;  %944 = vmatpush.msrb.mxu2 %v902_v56  ;;  %v862_v37 = vld [vmem:[#allocation18 + $0xb0] sm:$0xff] }
 0x150   : > { %909 = vmatpush.msrb.mxu0 %v880_v49  ;;  %929 = vmatpush.msrb.mxu1 %v881_v50  ;;  %v858_v28 = vld [vmem:[#allocation18 + $0x90] sm:$0xff] }
 0x151   : > { %969 = vmatpush.msrb.mxu3 %v883_v51  ;;  %945 = vmatpush.msrb.mxu2 %v898_v60  ;;  %v854_v29 = vld [vmem:[#allocation18 + $0x70] sm:$0xff] }
 0x152   : > { %910 = vmatpush.msrb.mxu0 %v876_v53  ;;  %930 = vmatpush.msrb.mxu1 %v877_v54  ;;  %v850_v38 = vld [vmem:[#allocation18 + $0x50] sm:$0xff] }
 0x153   : > { %970 = vmatpush.msrb.mxu3 %v879_v55  ;;  %946 = vmatpush.msrb.mxu2 %v894_v1  ;;  %v846_v35 = vld [vmem:[#allocation18 + $0x30] sm:$0xff] }
 0x154   : > { %911 = vmatpush.msrb.mxu0 %v872_v57  ;;  %931 = vmatpush.msrb.mxu1 %v873_v58  ;;  %v842_v39 = vld [vmem:[#allocation18 + $0x10] sm:$0xff]  ;;  %v612_v57 = vld [vmem:[%s1922_s17 + $0x10] sm:$0xff] }
 0x155   : > { %971 = vmatpush.msrb.mxu3 %v875_v59  ;;  %947 = vmatpush.msrb.mxu2 %v890_v5  ;;  %v613_v47 = vld [vmem:[%s1922_s17 + $0x18] sm:$0xff] }
 0x156   : > { %755 = vmatmul.f32.vlgmr.msra.gmra.mxu3 %v1915_v42  ;;  %912 = vmatpush.msrb.mxu0 %v868_v61 }
 0x157   : > { %932 = vmatpush.msrb.mxu1 %v869_v62  ;;  %972 = vmatpush.msrb.mxu3 %v871_v63  ;;  %v835_v62 = vld [vmem:[%s1931_s21] sm:$0xff]  ;;  %v836_v63 = vld [vmem:[%s1931_s21 + $0x8] sm:$0xff] }
 0x158   : > { %913 = vmatpush.msrb.mxu0 %v864_v0  ;;  %948 = vmatpush.msrb.mxu2 %v886_v9 }
 0x159   : > { %933 = vmatpush.msrb.mxu1 %v865_v2  ;;  %973 = vmatpush.msrb.mxu3 %v867_v3 }
 0x15a   : > { %914 = vmatpush.msrb.mxu0 %v860_v4  ;;  %735 = vmatmul.f32.vlgmr.msra.gmra.mxu2 %v1915_v42 }
 0x15b   : > { %934 = vmatpush.msrb.mxu1 %v861_v6  ;;  %974 = vmatpush.msrb.mxu3 %v863_v7 }
 0x15c   : > { %915 = vmatpush.msrb.mxu0 %v856_v8  ;;  %949 = vmatpush.msrb.mxu2 %v882_v15 }
 0x15d   : > { %935 = vmatpush.msrb.mxu1 %v857_v10  ;;  %975 = vmatpush.msrb.mxu3 %v859_v11 }
 0x15e   : > { %916 = vmatpush.msrb.mxu0 %v852_v12  ;;  %950 = vmatpush.msrb.mxu2 %v878_v19 }
 0x15f   : > { %936 = vmatpush.msrb.mxu1 %v853_v13  ;;  %976 = vmatpush.msrb.mxu3 %v855_v14 }
 0x160   : > { %917 = vmatpush.msrb.mxu0 %v848_v16  ;;  %951 = vmatpush.msrb.mxu2 %v874_v23 }
 0x161   : > { %937 = vmatpush.msrb.mxu1 %v849_v17  ;;  %977 = vmatpush.msrb.mxu3 %v851_v18 }
 0x162   : > { %918 = vmatpush.msrb.mxu0 %v844_v20  ;;  %952 = vmatpush.msrb.mxu2 %v870_v33  ;;  %v821_v20 = vld [vmem:[#allocation7] sm:$0xff] }
 0x163   : > { %938 = vmatpush.msrb.mxu1 %v845_v21  ;;  %978 = vmatpush.msrb.mxu3 %v847_v22  ;;  %v838_v22 = vld [vmem:[%s1931_s21 + $0x18] sm:$0xff] }
 0x164   : > { %919 = vmatpush.msrb.mxu0 %v840_v24  ;;  %953 = vmatpush.msrb.mxu2 %v866_v34 }
 0x165   : > { %939 = vmatpush.msrb.mxu1 %v841_v30  ;;  %979 = vmatpush.msrb.mxu3 %v843_v31 }
 0x166   : > { %920 = vmatmul.f32.vlgmr.msrb.gmra.mxu0 %v839_v32  ;;  %940 = vmatmul.f32.vlgmr.msrb.gmra.mxu1 %v839_v32 }
 0x167   : > { %980 = vmatmul.f32.vlgmr.msrb.gmra.mxu3 %v839_v32  ;;  %954 = vmatpush.msrb.mxu2 %v862_v37 }
 0x169   : > { %955 = vmatpush.msrb.mxu2 %v858_v28 }
 0x16b   : > { %956 = vmatpush.msrb.mxu2 %v854_v29 }
 0x16d   : > { %957 = vmatpush.msrb.mxu2 %v850_v38 }
 0x16f   : > { %958 = vmatpush.msrb.mxu2 %v846_v35 }
 0x171   : > { %959 = vmatpush.msrb.mxu2 %v842_v39 }
 0x172   : > { %960 = vmatmul.f32.vlgmr.msrb.gmra.mxu2 %v839_v32 }
 0x1c2   : > { %v716_v40 = vpop.f32.mrf.mxu1 }
 0x1c3   : > { %v760_v26 = vadd.f32 %v716_v40, %v611_v36 }
 0x1c5   : > { %v1325_v27 = vmul.f32 -1.442695, %v760_v26 }
 0x1c6   : > { %v696_v42 = vpop.f32.mrf.mxu0 }
 0x1c7   : > { %v759_v43 = vadd.f32 %v696_v42, %v610_v41  ;;  %1391 = vpow2.f32 %v1325_v27 }
 0x1c9   : > { %v1324_v44 = vmul.f32 -1.442695, %v759_v43 }
 0x1cb   : > { %1393 = vpow2.f32 %v1324_v44 }
 0x1cd   : > { %v1392_v25 = vpop.eup %1391 }
 0x1ce   : > { %v785_v45 = vadd.f32 1.0, %v1392_v25 }
 0x1d0   : > { %1395 = vrcp.f32 %v785_v45  ;;  %v797_v54 = vand.u32 2147483648, %v785_v45  ;;  %v795_v55 = vand.u32 2147483647, %v785_v45  ;;  %vm791_vm1 = vweird.f32 %v785_v45 }
 0x1d1   : > { %v1394_v46 = vpop.eup %1393 }
 0x1d2   : > { %v766_v48 = vadd.f32 1.0, %v1394_v46  ;;  %v798_v1 = vor.u32 1.1754944e-38, %v797_v54  ;;  %vm1939_vm5 = vcmp.eq.f32.partialorder %v795_v55, 8.507059e+37 }
 0x1d4   : > { %1397 = vrcp.f32 %v766_v48  ;;  %vm772_vm4 = vweird.f32 %v766_v48  ;;  %v776_v5 = vand.u32 2147483647, %v766_v48  ;;  %v778_v6 = vand.u32 2147483648, %v766_v48 }
 0x1d6   : > { %v1396_v51 = vpop.eup %1395  ;;  %v779_v18 = vor.u32 1.1754944e-38, %v778_v6  ;;  %vm777_vm8 = vcmp.eq.f32.partialorder %v776_v5, 8.507059e+37 }
 0x1d7   : > { %v787_v53 = vmul.f32 %v1396_v51, %v785_v45  ;;  %vm792_vm2 = vweird.f32 %v1396_v51 }
 0x1d8   : > { %vm1935_vm3 = vmor %vm791_vm1, %vm792_vm2 }
 0x1d9   : > { %v756_v49 = vpop.f32.mrf.mxu3  ;;  %v788_v56 = vsub.f32 1.0, %v787_v53 }
 0x1da   : > { %v762_v50 = vadd.f32 %v756_v49, %v613_v47  ;;  %v1398_v58 = vpop.eup %1397 }
 0x1db   : > { %v768_v59 = vmul.f32 %v1398_v58, %v766_v48  ;;  %v789_v60 = vmul.f32 %v1396_v51, %v788_v56  ;;  %vm773_vm6 = vweird.f32 %v1398_v58 }
 0x1dc   : > { %v1326_v52 = vmul.f32 -1.442695, %v762_v50  ;;  %vm774_vm7 = vmor %vm772_vm4, %vm773_vm6  ;;  %v837_v50 = vld [vmem:[%s1931_s21 + $0x10] sm:$0xff] }
 0x1dd   : > { %v736_v61 = vpop.f32.mrf.mxu2  ;;  %v769_v4 = vsub.f32 1.0, %v768_v59  ;;  %v790_v7 = vadd.f32 %v1396_v51, %v789_v60 }
 0x1de   : > { %1399 = vpow2.f32 %v1326_v52  ;;  %v761_v2 = vadd.f32 %v736_v61, %v612_v57 }
 0x1df   : > { %v770_v14 = vmul.f32 %v1398_v58, %v769_v4  ;;  %v794_v15 = vsel %vm1935_vm3, %v1396_v51, %v790_v7 }
 0x1e0   : > { %1401 = vtanh.f32 %v761_v2  ;;  %v799_v19 = vsel %vm1939_vm5, %v798_v1, %v794_v15 }
 0x1e1   : > { %v771_v21 = vadd.f32 %v1398_v58, %v770_v14  ;;  %v822_v30 = vmul.f32 %v821_v20, %v799_v19 }
 0x1e3   : > { %v921_v8 = vpop.f32.mrf.mxu0  ;;  %v941_v9 = vpop.f32.mrf.mxu1  ;;  %v775_v24 = vsel %vm774_vm7, %v1398_v58, %v771_v21 }
 0x1e4   : > { %v1400_v10 = vpop.eup %1399  ;;  %v984_v11 = vadd.f32 %v921_v8, %v835_v62  ;;  %v985_v12 = vadd.f32 %v941_v9, %v836_v63  ;;  %v780_v32 = vsel %vm777_vm8, %v779_v18, %v775_v24  ;;  %v1046_v8 = vld [vmem:[#allocation9] sm:$0xff] }
 0x1e5   : > { %v805_v13 = vadd.f32 1.0, %v1400_v10 }
 0x1e6   : > { %v1330_v16 = vmul.f32 -1.442695, %v984_v11  ;;  %v1331_v17 = vmul.f32 -1.442695, %v985_v12  ;;  %v1402_v23 = vpop.eup %1401 }
 0x1e7   : > { %1403 = vrcp.f32 %v805_v13  ;;  %v823_v34 = vmul.f32 %v1402_v23, %v780_v32  ;;  %vm811_vm9 = vweird.f32 %v805_v13  ;;  %v815_v36 = vand.u32 2147483647, %v805_v13  ;;  %v1080_v32 = vld [vmem:[#allocation19 + $0x78] sm:$0xff] (%p602_p0) }
 0x1e8   : > { %1405 = vpow2.f32 %v1330_v16  ;;  %v817_v40 = vand.u32 2147483648, %v805_v13  ;;  %1352 = vmatpush.msra.mxu3 (%p602_p0), %v1080_v32  ;;  %1146 = vmatpush.msra.mxu1 (%p602_p0), %v1080_v32 }
 0x1e9   : > { %1407 = vpow2.f32 %v1331_v17  ;;  %v824_v35 = vadd.f32 %v823_v34, %v822_v30  ;;  %vm816_vm12 = vcmp.eq.f32.partialorder %v815_v36, 8.507059e+37  ;;  %v1079_v34 = vld [vmem:[#allocation19 + $0x70] sm:$0xff] (%p602_p0) }
 0x1ea   : > { %v981_v31 = vpop.f32.mrf.mxu3  ;;  %v818_v43 = vor.u32 1.1754944e-38, %v817_v40  ;;  %1353 = vmatpush.msra.mxu3 (%p602_p0), %v1079_v34  ;;  %1147 = vmatpush.msra.mxu1 (%p602_p0), %v1079_v34  ;;  %v1099_v36 = vld [vmem:[#allocation21 + $0x50] sm:$0xff] (%p602_p0) }
 0x1eb   : > { %v987_v33 = vadd.f32 %v981_v31, %v838_v22  ;;  %827 = vst [vmem:[#allocation7] sm:$0xff] %v824_v35  ;;  %v1104_v31 = vld [vmem:[#allocation21 + $0x78] sm:$0xff] (%p602_p0)  ;;  %v1075_v40 = vld [vmem:[#allocation19 + $0x50] sm:$0xff] (%p602_p0) }
 0x1ec   :  { %1336 = vmatpush.msra.mxu2 (%p602_p0), %v1104_v31  ;;  %1105 = vmatpush.msra.mxu0 (%p602_p0), %v1104_v31 }
 0x1ed   : > { %v1404_v37 = vpop.eup %1403  ;;  %v1332_v28 = vmul.f32 -1.442695, %v987_v33  ;;  %v1103_v33 = vld [vmem:[#allocation21 + $0x70] sm:$0xff] (%p602_p0) }
 0x1ee   : > { %v1406_v29 = vpop.eup %1405  ;;  %v807_v38 = vmul.f32 %v1404_v37, %v805_v13  ;;  %vm812_vm10 = vweird.f32 %v1404_v37  ;;  %1337 = vmatpush.msra.mxu2 (%p602_p0), %v1103_v33  ;;  %1106 = vmatpush.msra.mxu0 (%p602_p0), %v1103_v33 }
 0x1ef   : > { %v1408_v39 = vpop.eup %1407  ;;  %v991_v26 = vadd.f32 1.0, %v1406_v29  ;;  %1409 = vpow2.f32 %v1332_v28  ;;  %vm813_vm11 = vmor %vm811_vm9, %vm812_vm10  ;;  %v1078_v28 = vld [vmem:[#allocation19 + $0x68] sm:$0xff] (%p602_p0)  ;;  %v1101_v29 = vld [vmem:[#allocation21 + $0x60] sm:$0xff] (%p602_p0) }
 0x1f0   : > { %v808_v41 = vsub.f32 1.0, %v807_v38  ;;  %1411 = vtanh.f32 %v824_v35  ;;  %v1010_v27 = vadd.f32 1.0, %v1408_v39  ;;  %v1077_v38 = vld [vmem:[#allocation19 + $0x60] sm:$0xff] (%p602_p0)  ;;  %1354 = vmatpush.msra.mxu3 (%p602_p0), %v1078_v28  ;;  %v1100_v35 = vld [vmem:[#allocation21 + $0x58] sm:$0xff] (%p602_p0)  ;;  %1148 = vmatpush.msra.mxu1 (%p602_p0), %v1078_v28 }
 0x1f1   : > { %1413 = vrcp.f32 %v991_v26  ;;  %v1001_v59 = vand.u32 2147483647, %v991_v26  ;;  %v1003_v60 = vand.u32 2147483648, %v991_v26  ;;  %vm997_vm15 = vweird.f32 %v991_v26  ;;  %v1076_v39 = vld [vmem:[#allocation19 + $0x58] sm:$0xff] (%p602_p0) }
 0x1f2   : > { %v809_v42 = vmul.f32 %v1404_v37, %v808_v41  ;;  %1415 = vrcp.f32 %v1010_v27  ;;  %v1022_v61 = vand.u32 2147483648, %v1010_v27  ;;  %v1020_v0 = vand.u32 2147483647, %v1010_v27  ;;  %1355 = vmatpush.msra.mxu3 (%p602_p0), %v1077_v38  ;;  %1149 = vmatpush.msra.mxu1 (%p602_p0), %v1077_v38  ;;  %v1074_v41 = vld [vmem:[#allocation19 + $0x48] sm:$0xff] (%p602_p0) }
 0x1f3   : > { %vm1016_vm0 = vweird.f32 %v1010_v27  ;;  %v1004_v4 = vor.u32 1.1754944e-38, %v1003_v60  ;;  %vm1002_vm3 = vcmp.eq.f32.partialorder %v1001_v59, 8.507059e+37 }
 0x1f4   : > { %v810_v44 = vadd.f32 %v1404_v37, %v809_v42  ;;  %v1023_v6 = vor.u32 1.1754944e-38, %v1022_v61  ;;  %vm1021_vm4 = vcmp.eq.f32.partialorder %v1020_v0, 8.507059e+37  ;;  %1356 = vmatpush.msra.mxu3 (%p602_p0), %v1076_v39  ;;  %1150 = vmatpush.msra.mxu1 (%p602_p0), %v1076_v39  ;;  %v1073_v42 = vld [vmem:[#allocation19 + $0x40] sm:$0xff] (%p602_p0) }
 0x1f5   : > { %v1410_v25 = vpop.eup %1409  ;;  %v961_v55 = vpop.f32.mrf.mxu2 }
 0x1f6   : > { %v1412_v45 = vpop.eup %1411  ;;  %v814_v46 = vsel %vm813_vm11, %v1404_v37, %v810_v44  ;;  %v1030_v47 = vadd.f32 1.0, %v1410_v25  ;;  %v986_v57 = vadd.f32 %v961_v55, %v837_v50  ;;  %v1102_v37 = vld [vmem:[#allocation21 + $0x68] sm:$0xff] (%p602_p0)  ;;  %1357 = vmatpush.msra.mxu3 (%p602_p0), %v1075_v40  ;;  %1151 = vmatpush.msra.mxu1 (%p602_p0), %v1075_v40  ;;  %v1072_v44 = vld [vmem:[#allocation19 + $0x38] sm:$0xff] (%p602_p0)  ;;  %v1095_v25 = vld [vmem:[#allocation21 + $0x30] sm:$0xff] (%p602_p0) }
 0x1f7   : > { %v1414_v48 = vpop.eup %1413  ;;  %v819_v49 = vsel %vm816_vm12, %v818_v43, %v814_v46  ;;  %1338 = vmatpush.msra.mxu2 (%p602_p0), %v1102_v37  ;;  %1107 = vmatpush.msra.mxu0 (%p602_p0), %v1102_v37  ;;  %v1096_v43 = vld [vmem:[#allocation21 + $0x38] sm:$0xff] (%p602_p0)  ;;  %v1094_v46 = vld [vmem:[#allocation21 + $0x28] sm:$0xff] (%p602_p0) }
 0x1f8   : > { %v1416_v51 = vpop.eup %1415  ;;  %v826_v52 = vmul.f32 %v1412_v45, %v819_v49  ;;  %v993_v53 = vmul.f32 %v1414_v48, %v991_v26  ;;  %1417 = vrcp.f32 %v1030_v47  ;;  %vm998_vm13 = vweird.f32 %v1414_v48  ;;  %v1098_v26 = vld [vmem:[#allocation21 + $0x48] sm:$0xff] (%p602_p0)  ;;  %1358 = vmatpush.msra.mxu3 (%p602_p0), %v1074_v41  ;;  %1152 = vmatpush.msra.mxu1 (%p602_p0), %v1074_v41  ;;  %v1071_v45 = vld [vmem:[#allocation19 + $0x30] sm:$0xff] (%p602_p0)  ;;  %v1069_v49 = vld [vmem:[#allocation19 + $0x20] sm:$0xff] (%p602_p0) }
 0x1f9   : > { %v1012_v54 = vmul.f32 %v1416_v51, %v1010_v27  ;;  %1419 = vtanh.f32 %v986_v57  ;;  %vm1017_vm14 = vweird.f32 %v1416_v51  ;;  %vm999_vm1 = vmor %vm997_vm15, %vm998_vm13  ;;  %v1042_v19 = vand.u32 2147483648, %v1030_v47  ;;  %1339 = vmatpush.msra.mxu2 (%p602_p0), %v1101_v29  ;;  %1108 = vmatpush.msra.mxu0 (%p602_p0), %v1101_v29  ;;  %v1097_v27 = vld [vmem:[#allocation21 + $0x40] sm:$0xff] (%p602_p0)  ;;  %v1092_v50 = vld [vmem:[#allocation21 + $0x18] sm:$0xff] (%p602_p0) }
 0x1fa   : > { %828 = vst [vmem:[#allocation6] sm:$0xff] %v826_v52  ;;  %v994_v56 = vsub.f32 1.0, %v993_v53  ;;  %vm1018_vm2 = vmor %vm1016_vm0, %vm1017_vm14  ;;  %vm1036_vm6 = vweird.f32 %v1030_v47  ;;  %v1040_v20 = vand.u32 2147483647, %v1030_v47  ;;  %1359 = vmatpush.msra.mxu3 (%p602_p0), %v1073_v42  ;;  %1153 = vmatpush.msra.mxu1 (%p602_p0), %v1073_v42  ;;  %v1067_v53 = vld [vmem:[#allocation19 + $0x10] sm:$0xff] (%p602_p0)  ;;  %v1066_v55 = vld [vmem:[#allocation19 + $0x8] sm:$0xff] (%p602_p0) }
 0x1fb   : > { %831 = vst [vmem:[%s830_s22] sm:$0xff] %v826_v52  ;;  %v1013_v58 = vsub.f32 1.0, %v1012_v54  ;;  %v1043_v22 = vor.u32 1.1754944e-38, %v1042_v19  ;;  %1340 = vmatpush.msra.mxu2 (%p602_p0), %v1100_v35  ;;  %1109 = vmatpush.msra.mxu0 (%p602_p0), %v1100_v35  ;;  %v1091_v52 = vld [vmem:[#allocation21 + $0x10] sm:$0xff] (%p602_p0)  ;;  %v1090_v54 = vld [vmem:[#allocation21 + $0x8] sm:$0xff] (%p602_p0)  ;;  %v1065_v57 = vld [vmem:[#allocation19] sm:$0xff] (%p602_p0) }
 0x1fc   : > { %v995_v62 = vmul.f32 %v1414_v48, %v994_v56  ;;  %vm1041_vm8 = vcmp.eq.f32.partialorder %v1040_v20, 8.507059e+37  ;;  %1360 = vmatpush.msra.mxu3 (%p602_p0), %v1072_v44  ;;  %1154 = vmatpush.msra.mxu1 (%p602_p0), %v1072_v44  ;;  %v1089_v56 = vld [vmem:[#allocation21] sm:$0xff] (%p602_p0) }
 0x1fd   : > { %v1014_v63 = vmul.f32 %v1416_v51, %v1013_v58  ;;  %1341 = vmatpush.msra.mxu2 (%p602_p0), %v1099_v36  ;;  %1110 = vmatpush.msra.mxu0 (%p602_p0), %v1099_v36 }
 0x1fe   : > { %v1418_v1 = vpop.eup %1417  ;;  %v996_v2 = vadd.f32 %v1414_v48, %v995_v62  ;;  %1361 = vmatpush.msra.mxu3 (%p602_p0), %v1071_v45  ;;  %1155 = vmatpush.msra.mxu1 (%p602_p0), %v1071_v45 }
 0x1ff   : > { %v1032_v3 = vmul.f32 %v1418_v1, %v1030_v47  ;;  %v1015_v5 = vadd.f32 %v1416_v51, %v1014_v63  ;;  %v1420_v12 = vpop.eup %1419  ;;  %vm1037_vm5 = vweird.f32 %v1418_v1  ;;  %1342 = vmatpush.msra.mxu2 (%p602_p0), %v1098_v26  ;;  %1111 = vmatpush.msra.mxu0 (%p602_p0), %v1098_v26  ;;  %v1070_v47 = vld [vmem:[#allocation19 + $0x28] sm:$0xff] (%p602_p0) }
 0x200   : > { %v1000_v7 = vsel %vm999_vm1, %v1414_v48, %v996_v2  ;;  %vm1038_vm7 = vmor %vm1036_vm6, %vm1037_vm5  ;;  %v1093_v48 = vld [vmem:[#allocation21 + $0x20] sm:$0xff] (%p602_p0)  ;;  %1362 = vmatpush.msra.mxu3 (%p602_p0), %v1070_v47  ;;  %1156 = vmatpush.msra.mxu1 (%p602_p0), %v1070_v47 }
 0x201   : > { %v1033_v9 = vsub.f32 1.0, %v1032_v3  ;;  %v1005_v10 = vsel %vm1002_vm3, %v1004_v4, %v1000_v7  ;;  %v1019_v11 = vsel %vm1018_vm2, %v1416_v51, %v1015_v5  ;;  %1343 = vmatpush.msra.mxu2 (%p602_p0), %v1097_v27  ;;  %1112 = vmatpush.msra.mxu0 (%p602_p0), %v1097_v27  ;;  %v1068_v51 = vld [vmem:[#allocation19 + $0x18] sm:$0xff] (%p602_p0) }
 0x202   : > { %v1024_v13 = vsel %vm1021_vm4, %v1023_v6, %v1019_v11  ;;  %v1048_v16 = vmul.f32 %v1420_v12, %v1005_v10  ;;  %1363 = vmatpush.msra.mxu3 (%p602_p0), %v1069_v49  ;;  %1157 = vmatpush.msra.mxu1 (%p602_p0), %v1069_v49  ;;  %v1061_v59 = vld [vmem:[#allocation4 + $0x20] sm:$0xff] (%p602_p0)  ;;  %v1062_v63 = vld [vmem:[#allocation4 + $0x28] sm:$0xff] (%p602_p0)  ;;  %v1063_v3 = vld [vmem:[#allocation4 + $0x30] sm:$0xff] (%p602_p0) }
 0x203   : > { %v1034_v14 = vmul.f32 %v1418_v1, %v1033_v9  ;;  %v1047_v15 = vmul.f32 %v1046_v8, %v1024_v13  ;;  %1344 = vmatpush.msra.mxu2 (%p602_p0), %v1096_v43  ;;  %1113 = vmatpush.msra.mxu0 (%p602_p0), %v1096_v43  ;;  %v1057_v61 = vld [vmem:[#allocation4] sm:$0xff] (%p602_p0)  ;;  %v1059_v5 = vld [vmem:[#allocation4 + $0x10] sm:$0xff] (%p602_p0)  ;;  %v1064_v7 = vld [vmem:[#allocation4 + $0x38] sm:$0xff] (%p602_p0) }
 0x204   :  { %1364 = vmatpush.msra.mxu3 (%p602_p0), %v1068_v51  ;;  %1158 = vmatpush.msra.mxu1 (%p602_p0), %v1068_v51  ;;  %v1060_v9 = vld [vmem:[#allocation4 + $0x18] sm:$0xff] (%p602_p0)  ;;  %v1423_v10 = vld [vmem:[%s1973_s7] ss:$0 sm:$0xff] (%p602_p0)  ;;  %s1664_s7 = smov (%p602_p0), [#allocation22]  }
 0x205   : > { %v1049_v17 = vadd.f32 %v1048_v16, %v1047_v15  ;;  %v1035_v18 = vadd.f32 %v1418_v1, %v1034_v14  ;;  %1345 = vmatpush.msra.mxu2 (%p602_p0), %v1095_v25  ;;  %1114 = vmatpush.msra.mxu0 (%p602_p0), %v1095_v25  ;;  %s1227_s29 = sshll.u32 (%p602_p0), %s1664_s7, 4  ;;  %s1228_s29 = int_to_ptr.vmem [resolvable:$true] %s1227_s29 }
 0x206   :  { %1365 = vmatpush.msra.mxu3 (%p602_p0), %v1067_v53  ;;  %1159 = vmatpush.msra.mxu1 (%p602_p0), %v1067_v53 }
 0x207   : > { %1421 = vtanh.f32 %v1049_v17  ;;  %1052 = vst [vmem:[#allocation9] sm:$0xff] %v1049_v17  ;;  %v1039_v21 = vsel %vm1038_vm7, %v1418_v1, %v1035_v18  ;;  %1346 = vmatpush.msra.mxu2 (%p602_p0), %v1094_v46  ;;  %1115 = vmatpush.msra.mxu0 (%p602_p0), %v1094_v46  ;;  %v1058_v1 = vld [vmem:[#allocation4 + $0x8] sm:$0xff] (%p602_p0) }
 0x208   : > { %v1044_v24 = vsel %vm1041_vm8, %v1043_v22, %v1039_v21  ;;  %1366 = vmatpush.msra.mxu3 (%p602_p0), %v1066_v55  ;;  %1160 = vmatpush.msra.mxu1 (%p602_p0), %v1066_v55 }
 0x209   :  { %1347 = vmatpush.msra.mxu2 (%p602_p0), %v1093_v48  ;;  %1116 = vmatpush.msra.mxu0 (%p602_p0), %v1093_v48 }
 0x20a   :  { %1367 = vmatpush.msra.mxu3 (%p602_p0), %v1065_v57  ;;  %1161 = vmatpush.msra.mxu1 (%p602_p0), %v1065_v57 }
 0x20b   :  { %1348 = vmatpush.msra.mxu2 (%p602_p0), %v1092_v50  ;;  %1117 = vmatpush.msra.mxu0 (%p602_p0), %v1092_v50 }
 0x20c   :  { %1174 = vmatmul.f32.vlgmr.msra.gmra.mxu3 (%p602_p0), %v1061_v59  ;;  %1162 = vmatmul.f32.vlgmr.msra.gmra.mxu1 (%p602_p0), %v1057_v61 }
 0x20d   : > { %v1422_v23 = vpop.eup %1421  ;;  %604 = sbr.rel (!%p602_p0) target bundleno = 293 (0x125), region = 91  ;;  %1349 = vmatpush.msra.mxu2 (%p602_p0), %v1091_v52  ;;  %1118 = vmatpush.msra.mxu0 (%p602_p0), %v1091_v52 }
 0x20e   : > { %v1051_v30 = vmul.f32 %v1422_v23, %v1044_v24 }
 0x20f   :  { %1350 = vmatpush.msra.mxu2 (%p602_p0), %v1090_v54  ;;  %1119 = vmatpush.msra.mxu0 (%p602_p0), %v1090_v54 }
 0x210   : > { %1053 = vst [vmem:[#allocation8] sm:$0xff] %v1051_v30 }
 0x211   : > { %1056 = vst [vmem:[%s1055_s24] sm:$0xff] %v1051_v30  ;;  %1351 = vmatpush.msra.mxu2 (%p602_p0), %v1089_v56  ;;  %1120 = vmatpush.msra.mxu0 (%p602_p0), %v1089_v56 }
 0x214   :  { %1177 = vmatmul.f32.gmra.mxu3 %v1062_v63  ;;  %1165 = vmatmul.f32.gmra.mxu1 %v1058_v1 }
 0x218   :  { %v1085_v58 = vld [vmem:[#allocation5 + $0x20] sm:$0xff]  ;;  %v1086_v62 = vld [vmem:[#allocation5 + $0x28] sm:$0xff]  ;;  %v1087_v2 = vld [vmem:[#allocation5 + $0x30] sm:$0xff] }
 0x219   :  { %v1081_v60 = vld [vmem:[#allocation5] sm:$0xff]  ;;  %1133 = vmatmul.f32.vlgmr.msra.gmra.mxu2 %v1085_v58  ;;  %v1082_v0 = vld [vmem:[#allocation5 + $0x8] sm:$0xff]  ;;  %v1083_v4 = vld [vmem:[#allocation5 + $0x10] sm:$0xff] }
 0x21a   :  { %1121 = vmatmul.f32.vlgmr.msra.gmra.mxu0 %v1081_v60  ;;  %v1088_v6 = vld [vmem:[#allocation5 + $0x38] sm:$0xff] }
 0x21b   :  { %v1084_v8 = vld [vmem:[#allocation5 + $0x18] sm:$0xff] }
 0x21c   :  { %1180 = vmatmul.f32.gmra.mxu3 %v1063_v3  ;;  %1168 = vmatmul.f32.gmra.mxu1 %v1059_v5 }
 0x221   :  { %1136 = vmatmul.f32.gmra.mxu2 %v1086_v62 }
 0x222   :  { %1124 = vmatmul.f32.gmra.mxu0 %v1082_v0 }
 0x224   :  { %1183 = vmatmul.f32.gmra.mxu3 %v1064_v7  ;;  %1171 = vmatmul.f32.gmra.mxu1 %v1060_v9 }
 0x229   :  { %1139 = vmatmul.f32.gmra.mxu2 %v1087_v2 }
 0x22a   :  { %1127 = vmatmul.f32.gmra.mxu0 %v1083_v4 }
 0x231   :  { %1142 = vmatmul.f32.gmra.mxu2 %v1088_v6 }
 0x232   :  { %1130 = vmatmul.f32.gmra.mxu0 %v1084_v8 }
 0x289   :  { %v1163_v12 = vpop.f32.mrf.mxu1 }
 0x28f   :  { %v1175_v16 = vpop.f32.mrf.mxu3 }
 0x291   :  { %v1166_v21 = vpop.f32.mrf.mxu1 }
 0x297   :  { %v1122_v11 = vpop.f32.mrf.mxu0  ;;  %v1178_v31 = vpop.f32.mrf.mxu3 }
 0x298   :  { %v1164_v13 = vadd.f32 %v1163_v12, %v1122_v11 }
 0x299   :  { %v1169_v29 = vpop.f32.mrf.mxu1 }
 0x29a   :  { %v1191_v14 = vadd.f32 %v1423_v10, %v1164_v13 }
 0x29c   :  { %v1134_v15 = vpop.f32.mrf.mxu2  ;;  %v1199_v17 = vmul.f32 1.442695, %v1191_v14 }
 0x29d   :  { %v1176_v18 = vadd.f32 %v1175_v16, %v1134_v15 }
 0x29e   :  { %1424 = vpow2.f32 %v1199_v17 }
 0x29f   :  { %v1195_v19 = vadd.f32 %v1423_v10, %v1176_v18  ;;  %v1125_v20 = vpop.f32.mrf.mxu0  ;;  %v1181_v26 = vpop.f32.mrf.mxu3 }
 0x2a0   :  { %v1167_v23 = vadd.f32 %v1166_v21, %v1125_v20 }
 0x2a1   :  { %v1207_v22 = vmul.f32 1.442695, %v1195_v19  ;;  %v1172_v25 = vpop.f32.mrf.mxu1 }
 0x2a2   :  { %v1192_v24 = vadd.f32 %v1423_v10, %v1167_v23 }
 0x2a3   :  { %1426 = vpow2.f32 %v1207_v22 }
 0x2a4   :  { %v1137_v30 = vpop.f32.mrf.mxu2  ;;  %v1425_v32 = vpop.eup %1424  ;;  %v1201_v33 = vmul.f32 1.442695, %v1192_v24 }
 0x2a5   :  { %v1179_v34 = vadd.f32 %v1178_v31, %v1137_v30  ;;  %1215 = vst [vmem:[#allocation22] sm:$0xff] %v1425_v32 }
 0x2a6   :  { %1428 = vpow2.f32 %v1201_v33 }
 0x2a7   :  { %v1196_v37 = vadd.f32 %v1423_v10, %v1179_v34  ;;  %v1128_v28 = vpop.f32.mrf.mxu0  ;;  %v1184_v50 = vpop.f32.mrf.mxu3 }
 0x2a8   :  { %v1170_v39 = vadd.f32 %v1169_v29, %v1128_v28 }
 0x2a9   :  { %v1427_v38 = vpop.eup %1426  ;;  %v1209_v35 = vmul.f32 1.442695, %v1196_v37 }
 0x2aa   :  { %1219 = vst [vmem:[#allocation22 + $0x20] sm:$0xff] %v1427_v38  ;;  %v1193_v36 = vadd.f32 %v1423_v10, %v1170_v39 }
 0x2ab   :  { %1430 = vpow2.f32 %v1209_v35 }
 0x2ac   :  { %v1140_v40 = vpop.f32.mrf.mxu2  ;;  %v1429_v41 = vpop.eup %1428  ;;  %v1203_v27 = vmul.f32 1.442695, %v1193_v36 }
 0x2ad   :  { %v1182_v42 = vadd.f32 %v1181_v26, %v1140_v40  ;;  %1216 = vst [vmem:[#allocation22 + $0x8] sm:$0xff] %v1429_v41 }
 0x2ae   :  { %1432 = vpow2.f32 %v1203_v27 }
 0x2af   :  { %v1197_v43 = vadd.f32 %v1423_v10, %v1182_v42  ;;  %v1131_v44 = vpop.f32.mrf.mxu0 }
 0x2b0   :  { %v1173_v47 = vadd.f32 %v1172_v25, %v1131_v44 }
 0x2b1   :  { %v1431_v45 = vpop.eup %1430  ;;  %v1211_v46 = vmul.f32 1.442695, %v1197_v43 }
 0x2b2   :  { %1220 = vst [vmem:[#allocation22 + $0x28] sm:$0xff] %v1431_v45  ;;  %v1194_v48 = vadd.f32 %v1423_v10, %v1173_v47 }
 0x2b3   :  { %1434 = vpow2.f32 %v1211_v46 }
 0x2b4   :  { %v1143_v49 = vpop.f32.mrf.mxu2  ;;  %v1433_v51 = vpop.eup %1432  ;;  %v1205_v52 = vmul.f32 1.442695, %v1194_v48 }
 0x2b5   :  { %v1185_v53 = vadd.f32 %v1184_v50, %v1143_v49  ;;  %1217 = vst [vmem:[#allocation22 + $0x10] sm:$0xff] %v1433_v51 }
 0x2b6   :  { %1436 = vpow2.f32 %v1205_v52 }
 0x2b7   :  { %v1198_v54 = vadd.f32 %v1423_v10, %v1185_v53 }
 0x2b9   :  { %v1435_v55 = vpop.eup %1434  ;;  %v1213_v56 = vmul.f32 1.442695, %v1198_v54 }
 0x2ba   :  { %1221 = vst [vmem:[#allocation22 + $0x30] sm:$0xff] %v1435_v55 }
 0x2bb   :  { %1438 = vpow2.f32 %v1213_v56 }
 0x2bc   :  { %v1437_v57 = vpop.eup %1436 }
 0x2bd   :  { %1218 = vst [vmem:[#allocation22 + $0x18] sm:$0xff] %v1437_v57 }
 0x2c1   :  { %v1439_v58 = vpop.eup %1438 }
 0x2c2   :  { %1222 = vst [vmem:[#allocation22 + $0x38] sm:$0xff] %v1439_v58 }
 0x2c3   :  { %1235 = dma.vmem_to_hbm [thread:$0]  %s1228_s29, 1024, %s1230_s0, [#allocation12], %s1657_s25, %s1657_s25, %s1658_s26  }
 0x2c4   :  { %1644 = dma.done.wait [#allocation12], 1024  }
 0x2c5   :  { %1645 = vsyncadd [#allocation12], 4294966272 }
 0x2c6   :  { %1240 = vsyncpa [#allocation11], 1 }
 0x2c7   :  { %1241 = vsyncpa [#allocation14], 1 }
 0x2c8   :  { %1242 = vsyncpa [#allocation17], 1 }
 0x2c9   :  { %1243 = vsyncpa [#allocation20], 1 }
 0x2ca   :  { %1244 = vsyncpa [#allocation12], 1 }

</bundles_post_ra>
